<compile_context>
chip_gen: v7x
topology: tpu7x:2x2x1
jax: 0.10.0
libtpu: 0.0.40
codegen_flags: <defaults>
</compile_context>

<pallas_src>
import functools

import jax
import jax.numpy as jnp
from jax.experimental import pallas as pl
from jax.experimental.pallas import tpu as pltpu

EPS = 1e-5  # PyTorch GroupNorm default eps


# --------------------------------------------------------------------------- #
# Kernels
# --------------------------------------------------------------------------- #
def _branch_kernel(g_ref, x_ref, wg_ref, bg_ref, wx_ref, bx_ref,
                   g1c_ref, x1c_ref, sg_ref, qg_ref, sx_ref, qx_ref,
                   *, S, tps, needs_mask):
    """Pass 1: conv branches (cached) + per-channel sum / sum-of-squares."""
    c = pl.program_id(1)
    s = pl.program_id(2)

    @pl.when(s == 0)
    def _():
        sg_ref[...] = jnp.zeros_like(sg_ref)
        qg_ref[...] = jnp.zeros_like(qg_ref)
        sx_ref[...] = jnp.zeros_like(sx_ref)
        qx_ref[...] = jnp.zeros_like(qx_ref)

    g1 = jnp.dot(wg_ref[...], g_ref[0],
                 preferred_element_type=jnp.float32) + bg_ref[...]
    x1 = jnp.dot(wx_ref[...], x_ref[0],
                 preferred_element_type=jnp.float32) + bx_ref[...]
    g1c_ref[0] = g1.astype(g1c_ref.dtype)
    x1c_ref[0] = x1.astype(x1c_ref.dtype)

    if needs_mask:  # zero padded spatial columns out of the statistics
        ts = g1.shape[1]
        col = (c * tps + s) * ts + jax.lax.broadcasted_iota(jnp.int32, (1, ts), 1)
        valid = col < S
        g1 = jnp.where(valid, g1, 0.0)
        x1 = jnp.where(valid, x1, 0.0)

    sg_ref[0, 0] = sg_ref[0, 0] + jnp.sum(g1, axis=1, keepdims=True)
    qg_ref[0, 0] = qg_ref[0, 0] + jnp.sum(g1 * g1, axis=1, keepdims=True)
    sx_ref[0, 0] = sx_ref[0, 0] + jnp.sum(x1, axis=1, keepdims=True)
    qx_ref[0, 0] = qx_ref[0, 0] + jnp.sum(x1 * x1, axis=1, keepdims=True)


def _psi_kernel(g1c_ref, x1c_ref, scg_ref, scx_ref, shc_ref, wp_ref, bp_ref,
                z_ref, zs_ref, zq_ref, *, S, tps, needs_mask):
    """Pass 2: psi logit z (cached) + its sum / sum-of-squares per batch."""
    c = pl.program_id(1)
    s = pl.program_id(2)

    @pl.when(s == 0)
    def _():
        zs_ref[...] = jnp.zeros_like(zs_ref)
        zq_ref[...] = jnp.zeros_like(zq_ref)

    g1 = g1c_ref[0].astype(jnp.float32)
    x1 = x1c_ref[0].astype(jnp.float32)
    # Both branch GroupNorms folded into per-(batch,channel) scale and one
    # combined shift (shift_g + shift_x); biases already live in the cache.
    p = jnp.maximum(g1 * scg_ref[0] + x1 * scx_ref[0] + shc_ref[0], 0.0)
    # psi 1x1x1 conv (F_int -> 1): VPU multiply + sublane reduction (lane dense).
    z = jnp.sum(p * wp_ref[...], axis=0, keepdims=True) + bp_ref[0]   # (1, TS)
    z_ref[0] = z

    if needs_mask:
        ts = z.shape[1]
        col = (c * tps + s) * ts + jax.lax.broadcasted_iota(jnp.int32, (1, ts), 1)
        z = jnp.where(col < S, z, 0.0)

    zs_ref[0, 0] = zs_ref[0, 0] + jnp.sum(z, axis=1, keepdims=True)
    zq_ref[0, 0] = zq_ref[0, 0] + jnp.sum(z * z, axis=1, keepdims=True)


def _apply_kernel(x_ref, z_ref, scp_ref, shp_ref, out_ref):
    """Pass 3: out = x * sigmoid(groupnorm(z)).  Pure VPU/EUP stream."""
    n = pl.program_id(0)
    psi = jax.nn.sigmoid(z_ref[0] * scp_ref[n] + shp_ref[n])          # (1, TS)
    out_ref[0] = (x_ref[0].astype(jnp.float32) * psi).astype(out_ref.dtype)


# --------------------------------------------------------------------------- #
# Host-side glue
# --------------------------------------------------------------------------- #
def _pick_s_tile(S_pad, cap):
    """Largest multiple of 128 that divides S_pad, capped at `cap`."""
    ts = max(128, (min(cap, S_pad) // 128) * 128)
    while ts > 128 and S_pad % ts != 0:
        ts -= 128
    return ts


def _fold_group_norm(ch_sum, ch_sq, gamma, beta, S, groups):
    """Per-channel sums -> per-(batch, channel) affine: y = conv_out*scale+shift."""
    N, C = ch_sum.shape[0], ch_sum.shape[1]
    cg = C // groups
    gs = ch_sum.reshape(N, groups, cg).sum(axis=2)                 # (N, G)
    gq = ch_sq.reshape(N, groups, cg).sum(axis=2)
    cnt = float(S * cg)
    mean = gs / cnt
    var = jnp.maximum(gq / cnt - mean * mean, 0.0)                 # clamp round-off
    inv = jax.lax.rsqrt(var + EPS)
    mean_c = jnp.repeat(mean, cg, axis=1)                          # (N, C)
    inv_c = jnp.repeat(inv, cg, axis=1)
    gamma = gamma.reshape(1, C).astype(jnp.float32)
    beta = beta.reshape(1, C).astype(jnp.float32)
    scale = inv_c * gamma
    shift = beta - mean_c * scale
    return scale[..., None], shift[..., None]                      # (N, C, 1)


def attention_block(g, x, params, *, num_groups=4, max_s_tile=8192,
                    num_s_splits=2, cache_dtype=None, vmem_limit_bytes=None):
    """g: (N, F_g, D, H, W), x: (N, F_l, D, H, W) -> (N, F_l, D, H, W)."""
    N, F_g = g.shape[0], g.shape[1]
    F_l = x.shape[1]
    F_int = params["wg"].shape[0]
    S = 1
    for d in g.shape[2:]:
        S *= int(d)
    f32 = jnp.float32
    act_dt = x.dtype
    c_dt = act_dt if cache_dtype is None else cache_dtype          # g1/x1 cache

    # Pad the spatial axis to a multiple of 128 (no full-S fallback blocks).
    S_pad = ((S + 127) // 128) * 128
    needs_mask = S_pad != S
    TS = _pick_s_tile(S_pad, max_s_tile)
    n_tiles = S_pad // TS
    n_split = num_s_splits if (num_s_splits > 1 and
                               n_tiles % num_s_splits == 0) else 1
    tps = n_tiles // n_split                                       # tiles per split

    g2 = g.reshape(N, F_g, S)
    x2 = x.reshape(N, F_l, S)
    if needs_mask:
        pad = ((0, 0), (0, 0), (0, S_pad - S))
        g2 = jnp.pad(g2, pad)
        x2 = jnp.pad(x2, pad)

    wg = params["wg"].astype(act_dt)                               # (F_int, F_g)
    wx = params["wx"].astype(act_dt)                               # (F_int, F_l)
    wp = params["wp"].reshape(F_int, 1).astype(f32)
    bg = params["bg"].reshape(F_int, 1).astype(f32)
    bx = params["bx"].reshape(F_int, 1).astype(f32)
    bp = params["bp"].reshape(1).astype(f32)                       # SMEM scalar

    # VMEM budget from actual double-buffered block sizes + f32 intermediates,
    # clamped to <= 40 MiB so it also fits v7x's 64 MiB / TC.
    act_b = jnp.dtype(act_dt).itemsize
    c_b = jnp.dtype(c_dt).itemsize
    if vmem_limit_bytes is None:
        p1 = (F_g + F_l) * TS * act_b + 2 * F_int * TS * c_b
        p2 = 2 * F_int * TS * c_b + TS * 4
        p3 = (2 * F_l + 1) * TS * act_b + TS * 4
        est = 2 * max(p1, p2, p3) + 6 * F_int * TS * 4 + (4 << 20)
        vmem_limit_bytes = int(min(max(est, 16 << 20), 40 << 20))

    # ---- BlockSpecs (grid for passes 1-2 is (N, n_split, tiles_per_split)) ---
    # If xprof shows exposed DMA at tile boundaries, the g/x/cache in_specs of
    # passes 1-2 can take pipeline_mode=pl.Buffered(3); default 2 is enough here.
    g_spec = pl.BlockSpec((1, F_g, TS), lambda n, c, s: (n, 0, c * tps + s))
    x_spec = pl.BlockSpec((1, F_l, TS), lambda n, c, s: (n, 0, c * tps + s))
    wg_spec = pl.BlockSpec((F_int, F_g), lambda n, c, s: (0, 0))
    wx_spec = pl.BlockSpec((F_int, F_l), lambda n, c, s: (0, 0))
    cvec_spec = pl.BlockSpec((F_int, 1), lambda n, c, s: (0, 0))   # bg/bx/wp
    bvec_spec = pl.BlockSpec((1, F_int, 1), lambda n, c, s: (n, 0, 0))
    cache_spec = pl.BlockSpec((1, F_int, TS), lambda n, c, s: (n, 0, c * tps + s))
    zcache_spec = pl.BlockSpec((1, 1, TS), lambda n, c, s: (n, 0, c * tps + s))
    stat_spec = pl.BlockSpec((1, 1, F_int, 1), lambda n, c, s: (n, c, 0, 0))
    zstat_spec = pl.BlockSpec((1, 1, 1, 1), lambda n, c, s: (n, c, 0, 0))
    smem_spec = pl.BlockSpec(memory_space=pltpu.MemorySpace.SMEM)

    cp_acc = pltpu.CompilerParams(
        dimension_semantics=("parallel", "parallel", "arbitrary"),
        vmem_limit_bytes=vmem_limit_bytes)

    # ---- Pass 1: conv branches (cached) + per-channel stats ------------------
    g1c, x1c, sg, qg, sx, qx = pl.pallas_call(
        functools.partial(_branch_kernel, S=S, tps=tps, needs_mask=needs_mask),
        grid=(N, n_split, tps),
        in_specs=[g_spec, x_spec, wg_spec, cvec_spec, wx_spec, cvec_spec],
        out_specs=(cache_spec, cache_spec,
                   stat_spec, stat_spec, stat_spec, stat_spec),
        out_shape=(jax.ShapeDtypeStruct((N, F_int, S_pad), c_dt),
                   jax.ShapeDtypeStruct((N, F_int, S_pad), c_dt),
                   jax.ShapeDtypeStruct((N, n_split, F_int, 1), f32),
                   jax.ShapeDtypeStruct((N, n_split, F_int, 1), f32),
                   jax.ShapeDtypeStruct((N, n_split, F_int, 1), f32),
                   jax.ShapeDtypeStruct((N, n_split, F_int, 1), f32)),
        compiler_params=cp_acc,
    )(g2, x2, wg, bg, wx, bx)

    scale_g, shift_g = _fold_group_norm(sg.sum(axis=1), qg.sum(axis=1),
                                        params["gam_g"], params["bet_g"],
                                        S, num_groups)
    scale_x, shift_x = _fold_group_norm(sx.sum(axis=1), qx.sum(axis=1),
                                        params["gam_x"], params["bet_x"],
                                        S, num_groups)
    shift_c = shift_g + shift_x                                    # combined shift

    # ---- Pass 2: psi logit (cached) + its stats ------------------------------
    z, zs, zq = pl.pallas_call(
        functools.partial(_psi_kernel, S=S, tps=tps, needs_mask=needs_mask),
        grid=(N, n_split, tps),
        in_specs=[cache_spec, cache_spec, bvec_spec, bvec_spec, bvec_spec,
                  cvec_spec, smem_spec],
        out_specs=(zcache_spec, zstat_spec, zstat_spec),
        out_shape=(jax.ShapeDtypeStruct((N, 1, S_pad), f32),
                   jax.ShapeDtypeStruct((N, n_split, 1, 1), f32),
                   jax.ShapeDtypeStruct((N, n_split, 1, 1), f32)),
        compiler_params=cp_acc,
    )(g1c, x1c, scale_g, scale_x, shift_c, wp, bp)

    zs_t = zs.sum(axis=1)[:, 0, 0]
    zq_t = zq.sum(axis=1)[:, 0, 0]
    z_mean = zs_t / S
    z_var = jnp.maximum(zq_t / S - z_mean * z_mean, 0.0)
    z_inv = jax.lax.rsqrt(z_var + EPS)
    gam_p = params["gam_p"].reshape(()).astype(f32)
    bet_p = params["bet_p"].reshape(()).astype(f32)
    scale_p = (z_inv * gam_p).astype(f32)                          # (N,)
    shift_p = (bet_p - z_mean * z_inv * gam_p).astype(f32)         # (N,)

    # ---- Pass 3: apply the attention gate (reads only x and z) ---------------
    xa_spec = pl.BlockSpec((1, F_l, TS), lambda n, s: (n, 0, s))
    za_spec = pl.BlockSpec((1, 1, TS), lambda n, s: (n, 0, s))
    out_spec = pl.BlockSpec((1, F_l, TS), lambda n, s: (n, 0, s))

    out = pl.pallas_call(
        _apply_kernel,
        grid=(N, n_tiles),
        in_specs=[xa_spec, za_spec, smem_spec, smem_spec],
        out_specs=out_spec,
        out_shape=jax.ShapeDtypeStruct((N, F_l, S_pad), act_dt),
        compiler_params=pltpu.CompilerParams(
            dimension_semantics=("parallel", "parallel"),
            vmem_limit_bytes=vmem_limit_bytes),
    )(x2, z, scale_p, shift_p)

    if needs_mask:
        out = out[:, :, :S]
    return out.reshape(x.shape)


# --------------------------------------------------------------------------- #
# Pure-JAX reference (mirrors the PyTorch module) and self-test
# --------------------------------------------------------------------------- #
def ref_forward(g, x, p, num_groups=4):
    gf = g.reshape(g.shape[0], g.shape[1], -1)
    xf = x.reshape(x.shape[0], x.shape[1], -1)

    def gn(t, gamma, beta, groups):
        N, C, S = t.shape
        tg = t.reshape(N, groups, C // groups, S)
        mean = tg.mean(axis=(2, 3), keepdims=True)
        var = tg.var(axis=(2, 3), keepdims=True)
        tn = ((tg - mean) / jnp.sqrt(var + EPS)).reshape(N, C, S)
        return tn * gamma[None, :, None] + beta[None, :, None]

    g1 = gn(jnp.einsum("oc,ncs->nos", p["wg"], gf) + p["bg"][None, :, None],
            p["gam_g"], p["bet_g"], num_groups)
    x1 = gn(jnp.einsum("oc,ncs->nos", p["wx"], xf) + p["bx"][None, :, None],
            p["gam_x"], p["bet_x"], num_groups)
    ps = jnp.maximum(g1 + x1, 0.0)
    z = gn(jnp.einsum("oc,ncs->nos", p["wp"], ps) + p["bp"][None, :, None],
           p["gam_p"], p["bet_p"], 1)
    return (xf * jax.nn.sigmoid(z)).reshape(x.shape)


if __name__ == "__main__":
    F_g, F_l, F_int = 16, 16, 8
    num_groups = 4

    key = jax.random.PRNGKey(0)
    ks = jax.random.split(key, 14)

    params = {
        # Conv3d(k=1) weights stored as (Cout, Cin) for channels-first matmul.
        "wg": 0.2 * jax.random.normal(ks[2], (F_int, F_g), jnp.float32),
        "bg": 0.1 * jax.random.normal(ks[3], (F_int,), jnp.float32),
        "gam_g": 1.0 + 0.1 * jax.random.normal(ks[4], (F_int,), jnp.float32),
        "bet_g": 0.1 * jax.random.normal(ks[5], (F_int,), jnp.float32),
        "wx": 0.2 * jax.random.normal(ks[6], (F_int, F_l), jnp.float32),
        "bx": 0.1 * jax.random.normal(ks[7], (F_int,), jnp.float32),
        "gam_x": 1.0 + 0.1 * jax.random.normal(ks[8], (F_int,), jnp.float32),
        "bet_x": 0.1 * jax.random.normal(ks[9], (F_int,), jnp.float32),
        "wp": 0.2 * jax.random.normal(ks[10], (1, F_int), jnp.float32),
        "bp": 0.1 * jax.random.normal(ks[11], (1,), jnp.float32),
        "gam_p": jnp.array([1.05], jnp.float32),
        "bet_p": jnp.array([0.02], jnp.float32),
    }

    # Case 1: N=2, S=512 (8x8x8) with 128-lane tiles -> multi-tile accumulation
    # plus the 2-way S-split parallel axis (v7x both-cores path).
    g1_in = jax.random.normal(ks[0], (2, F_g, 8, 8, 8), jnp.float32)
    x1_in = jax.random.normal(ks[1], (2, F_l, 8, 8, 8), jnp.float32)
    fwd1 = jax.jit(functools.partial(attention_block, num_groups=num_groups,
                                     max_s_tile=128))
    out1 = jax.block_until_ready(fwd1(g1_in, x1_in, params))
    ref1 = ref_forward(g1_in, x1_in, params, num_groups)
    err1 = float(jnp.max(jnp.abs(out1 - ref1)))
    assert out1.shape == ref1.shape
    assert jnp.allclose(out1, ref1, atol=2e-5, rtol=2e-5), f"case1 err {err1}"

    # Case 2: N=1, S=125 (5x5x5) -> spatial padding to 128 with masked stats.
    g2_in = jax.random.normal(ks[12], (1, F_g, 5, 5, 5), jnp.float32)
    x2_in = jax.random.normal(ks[13], (1, F_l, 5, 5, 5), jnp.float32)
    fwd2 = jax.jit(functools.partial(attention_block, num_groups=num_groups))
    out2 = jax.block_until_ready(fwd2(g2_in, x2_in, params))
    ref2 = ref_forward(g2_in, x2_in, params, num_groups)
    err2 = float(jnp.max(jnp.abs(out2 - ref2)))
    assert out2.shape == ref2.shape
    assert jnp.allclose(out2, ref2, atol=2e-5, rtol=2e-5), f"case2 err {err2}"

    print("KERNEL_OK")
</pallas_src>

<mosaic_0001>
module attributes {stable_mosaic.version = 11 : i64} {
  func.func @_branch_kernel(%arg0: i32, %arg1: i32, %arg2: i32, %arg3: memref<1x16x128xf32, #tpu.memory_space<vmem>>, %arg4: memref<1x16x128xf32, #tpu.memory_space<vmem>>, %arg5: memref<8x16xf32, #tpu.memory_space<vmem>>, %arg6: memref<8x1xf32, #tpu.memory_space<vmem>>, %arg7: memref<8x16xf32, #tpu.memory_space<vmem>>, %arg8: memref<8x1xf32, #tpu.memory_space<vmem>>, %arg9: memref<1x8x128xf32, #tpu.memory_space<vmem>>, %arg10: memref<1x8x128xf32, #tpu.memory_space<vmem>>, %arg11: memref<1x1x8x1xf32, #tpu.memory_space<vmem>>, %arg12: memref<1x1x8x1xf32, #tpu.memory_space<vmem>>, %arg13: memref<1x1x8x1xf32, #tpu.memory_space<vmem>>, %arg14: memref<1x1x8x1xf32, #tpu.memory_space<vmem>>) attributes {dimension_semantics = [#tpu.dimension_semantics<parallel>, #tpu.dimension_semantics<parallel>, #tpu.dimension_semantics<arbitrary>], iteration_bounds = array<i64: 2, 2, 2>, scalar_prefetch = 0 : i64, scratch_operands = 0 : i64, tpu.core_type = #tpu.core_type<tc>, window_params = [{transform_indices = @transform_0, window_bounds = array<i64: 1, 16, 128>}, {transform_indices = @transform_1, window_bounds = array<i64: 1, 16, 128>}, {pipeline_mode = #tpu.pipeline_mode<synchronous>, transform_indices = @transform_2, window_bounds = array<i64: 8, 16>}, {pipeline_mode = #tpu.pipeline_mode<synchronous>, transform_indices = @transform_3, window_bounds = array<i64: 8, 1>}, {pipeline_mode = #tpu.pipeline_mode<synchronous>, transform_indices = @transform_4, window_bounds = array<i64: 8, 16>}, {pipeline_mode = #tpu.pipeline_mode<synchronous>, transform_indices = @transform_5, window_bounds = array<i64: 8, 1>}, {transform_indices = @transform_6, window_bounds = array<i64: 1, 8, 128>}, {transform_indices = @transform_7, window_bounds = array<i64: 1, 8, 128>}, {transform_indices = @transform_8, window_bounds = array<i64: 1, 1, 8, 1>}, {transform_indices = @transform_9, window_bounds = array<i64: 1, 1, 8, 1>}, {transform_indices = @transform_10, window_bounds = array<i64: 1, 1, 8, 1>}, {transform_indices = @transform_11, window_bounds = array<i64: 1, 1, 8, 1>}]} {
    %c0_i32 = arith.constant 0 : i32
    %0 = arith.cmpi eq, %arg2, %c0_i32 : i32
    %1 = arith.extui %0 : i1 to i32
    %c0_i32_0 = arith.constant 0 : i32
    %2 = arith.cmpi ne, %1, %c0_i32_0 : i32
    scf.if %2 {
      %cst_57 = arith.constant 0.000000e+00 : f32
      %57 = vector.broadcast %cst_57 : f32 to vector<1x1x8x1xf32>
      %c0_58 = arith.constant 0 : index
      %c0_59 = arith.constant 0 : index
      %c0_60 = arith.constant 0 : index
      %c0_61 = arith.constant 0 : index
      %58 = vector.load %arg11[%c0_58, %c0_59, %c0_60, %c0_61] : memref<1x1x8x1xf32, #tpu.memory_space<vmem>>, vector<1x1x8x1xf32>
      tpu.vector_store %arg11[%c0_58, %c0_59, %c0_60, %c0_61], %57 {strides = array<i32>} : memref<1x1x8x1xf32, #tpu.memory_space<vmem>>, vector<1x1x8x1xf32>,
      %cst_62 = arith.constant 0.000000e+00 : f32
      %59 = vector.broadcast %cst_62 : f32 to vector<1x1x8x1xf32>
      %c0_63 = arith.constant 0 : index
      %c0_64 = arith.constant 0 : index
      %c0_65 = arith.constant 0 : index
      %c0_66 = arith.constant 0 : index
      %60 = vector.load %arg12[%c0_63, %c0_64, %c0_65, %c0_66] : memref<1x1x8x1xf32, #tpu.memory_space<vmem>>, vector<1x1x8x1xf32>
      tpu.vector_store %arg12[%c0_63, %c0_64, %c0_65, %c0_66], %59 {strides = array<i32>} : memref<1x1x8x1xf32, #tpu.memory_space<vmem>>, vector<1x1x8x1xf32>,
      %cst_67 = arith.constant 0.000000e+00 : f32
      %61 = vector.broadcast %cst_67 : f32 to vector<1x1x8x1xf32>
      %c0_68 = arith.constant 0 : index
      %c0_69 = arith.constant 0 : index
      %c0_70 = arith.constant 0 : index
      %c0_71 = arith.constant 0 : index
      %62 = vector.load %arg13[%c0_68, %c0_69, %c0_70, %c0_71] : memref<1x1x8x1xf32, #tpu.memory_space<vmem>>, vector<1x1x8x1xf32>
      tpu.vector_store %arg13[%c0_68, %c0_69, %c0_70, %c0_71], %61 {strides = array<i32>} : memref<1x1x8x1xf32, #tpu.memory_space<vmem>>, vector<1x1x8x1xf32>,
      %cst_72 = arith.constant 0.000000e+00 : f32
      %63 = vector.broadcast %cst_72 : f32 to vector<1x1x8x1xf32>
      %c0_73 = arith.constant 0 : index
      %c0_74 = arith.constant 0 : index
      %c0_75 = arith.constant 0 : index
      %c0_76 = arith.constant 0 : index
      %64 = vector.load %arg14[%c0_73, %c0_74, %c0_75, %c0_76] : memref<1x1x8x1xf32, #tpu.memory_space<vmem>>, vector<1x1x8x1xf32>
      tpu.vector_store %arg14[%c0_73, %c0_74, %c0_75, %c0_76], %63 {strides = array<i32>} : memref<1x1x8x1xf32, #tpu.memory_space<vmem>>, vector<1x1x8x1xf32>,
    } else {
    }
    %c0 = arith.constant 0 : index
    %c0_1 = arith.constant 0 : index
    %3 = vector.load %arg5[%c0, %c0_1] : memref<8x16xf32, #tpu.memory_space<vmem>>, vector<8x16xf32>
    %c0_2 = arith.constant 0 : index
    %c0_3 = arith.constant 0 : index
    %c0_4 = arith.constant 0 : index
    %4 = vector.load %arg3[%c0_2, %c0_3, %c0_4] : memref<1x16x128xf32, #tpu.memory_space<vmem>>, vector<1x16x128xf32>
    %5 = vector.shape_cast %4 : vector<1x16x128xf32> to vector<16x128xf32>
    %cst = arith.constant dense<0.000000e+00> : vector<8x128xf32>
    %6 = tpu.matmul %3, %5, %cst {dimension_numbers = #tpu.dot_dimension_numbers<[1], [0], [0], [1], [0, 0, 1, 1], [], []>} : vector<8x16xf32>, vector<16x128xf32>, vector<8x128xf32> -> vector<8x128xf32>
    %c0_5 = arith.constant 0 : index
    %c0_6 = arith.constant 0 : index
    %7 = vector.load %arg6[%c0_5, %c0_6] : memref<8x1xf32, #tpu.memory_space<vmem>>, vector<8x1xf32>
    %8 = vector.broadcast %7 : vector<8x1xf32> to vector<8x128xf32>
    %9 = arith.addf %6, %8 : vector<8x128xf32>
    %c0_7 = arith.constant 0 : index
    %c0_8 = arith.constant 0 : index
    %10 = vector.load %arg7[%c0_7, %c0_8] : memref<8x16xf32, #tpu.memory_space<vmem>>, vector<8x16xf32>
    %c0_9 = arith.constant 0 : index
    %c0_10 = arith.constant 0 : index
    %c0_11 = arith.constant 0 : index
    %11 = vector.load %arg4[%c0_9, %c0_10, %c0_11] : memref<1x16x128xf32, #tpu.memory_space<vmem>>, vector<1x16x128xf32>
    %12 = vector.shape_cast %11 : vector<1x16x128xf32> to vector<16x128xf32>
    %cst_12 = arith.constant dense<0.000000e+00> : vector<8x128xf32>
    %13 = tpu.matmul %10, %12, %cst_12 {dimension_numbers = #tpu.dot_dimension_numbers<[1], [0], [0], [1], [0, 0, 1, 1], [], []>} : vector<8x16xf32>, vector<16x128xf32>, vector<8x128xf32> -> vector<8x128xf32>
    %c0_13 = arith.constant 0 : index
    %c0_14 = arith.constant 0 : index
    %14 = vector.load %arg8[%c0_13, %c0_14] : memref<8x1xf32, #tpu.memory_space<vmem>>, vector<8x1xf32>
    %15 = vector.broadcast %14 : vector<8x1xf32> to vector<8x128xf32>
    %16 = arith.addf %13, %15 : vector<8x128xf32>
    %c0_15 = arith.constant 0 : index
    %c0_16 = arith.constant 0 : index
    %c0_17 = arith.constant 0 : index
    %17 = vector.load %arg9[%c0_15, %c0_16, %c0_17] : memref<1x8x128xf32, #tpu.memory_space<vmem>>, vector<1x8x128xf32>
    %18 = vector.shape_cast %17 : vector<1x8x128xf32> to vector<8x128xf32>
    %19 = vector.shape_cast %9 : vector<8x128xf32> to vector<1x8x128xf32>
    tpu.vector_store %arg9[%c0_15, %c0_16, %c0_17], %19 {strides = array<i32>} : memref<1x8x128xf32, #tpu.memory_space<vmem>>, vector<1x8x128xf32>,
    %c0_18 = arith.constant 0 : index
    %c0_19 = arith.constant 0 : index
    %c0_20 = arith.constant 0 : index
    %20 = vector.load %arg10[%c0_18, %c0_19, %c0_20] : memref<1x8x128xf32, #tpu.memory_space<vmem>>, vector<1x8x128xf32>
    %21 = vector.shape_cast %20 : vector<1x8x128xf32> to vector<8x128xf32>
    %22 = vector.shape_cast %16 : vector<8x128xf32> to vector<1x8x128xf32>
    tpu.vector_store %arg10[%c0_18, %c0_19, %c0_20], %22 {strides = array<i32>} : memref<1x8x128xf32, #tpu.memory_space<vmem>>, vector<1x8x128xf32>,
    %c0_21 = arith.constant 0 : index
    %c0_22 = arith.constant 0 : index
    %c0_23 = arith.constant 0 : index
    %c0_24 = arith.constant 0 : index
    %23 = vector.load %arg11[%c0_21, %c0_22, %c0_23, %c0_24] : memref<1x1x8x1xf32, #tpu.memory_space<vmem>>, vector<1x1x8x1xf32>
    %24 = vector.shape_cast %23 : vector<1x1x8x1xf32> to vector<8x1xf32>
    %cst_25 = arith.constant dense<0.000000e+00> : vector<8xf32>
    %25 = vector.multi_reduction <add>, %9, %cst_25 [1] : vector<8x128xf32> to vector<8xf32>
    %26 = vector.shape_cast %25 : vector<8xf32> to vector<8x1xf32>
    %27 = arith.addf %24, %26 : vector<8x1xf32>
    %c0_26 = arith.constant 0 : index
    %c0_27 = arith.constant 0 : index
    %c0_28 = arith.constant 0 : index
    %c0_29 = arith.constant 0 : index
    %28 = vector.load %arg11[%c0_26, %c0_27, %c0_28, %c0_29] : memref<1x1x8x1xf32, #tpu.memory_space<vmem>>, vector<1x1x8x1xf32>
    %29 = vector.shape_cast %28 : vector<1x1x8x1xf32> to vector<8x1xf32>
    %30 = vector.shape_cast %27 : vector<8x1xf32> to vector<1x1x8x1xf32>
    tpu.vector_store %arg11[%c0_26, %c0_27, %c0_28, %c0_29], %30 {strides = array<i32>} : memref<1x1x8x1xf32, #tpu.memory_space<vmem>>, vector<1x1x8x1xf32>,
    %c0_30 = arith.constant 0 : index
    %c0_31 = arith.constant 0 : index
    %c0_32 = arith.constant 0 : index
    %c0_33 = arith.constant 0 : index
    %31 = vector.load %arg12[%c0_30, %c0_31, %c0_32, %c0_33] : memref<1x1x8x1xf32, #tpu.memory_space<vmem>>, vector<1x1x8x1xf32>
    %32 = vector.shape_cast %31 : vector<1x1x8x1xf32> to vector<8x1xf32>
    %33 = arith.mulf %9, %9 : vector<8x128xf32>
    %cst_34 = arith.constant dense<0.000000e+00> : vector<8xf32>
    %34 = vector.multi_reduction <add>, %33, %cst_34 [1] : vector<8x128xf32> to vector<8xf32>
    %35 = vector.shape_cast %34 : vector<8xf32> to vector<8x1xf32>
    %36 = arith.addf %32, %35 : vector<8x1xf32>
    %c0_35 = arith.constant 0 : index
    %c0_36 = arith.constant 0 : index
    %c0_37 = arith.constant 0 : index
    %c0_38 = arith.constant 0 : index
    %37 = vector.load %arg12[%c0_35, %c0_36, %c0_37, %c0_38] : memref<1x1x8x1xf32, #tpu.memory_space<vmem>>, vector<1x1x8x1xf32>
    %38 = vector.shape_cast %37 : vector<1x1x8x1xf32> to vector<8x1xf32>
    %39 = vector.shape_cast %36 : vector<8x1xf32> to vector<1x1x8x1xf32>
    tpu.vector_store %arg12[%c0_35, %c0_36, %c0_37, %c0_38], %39 {strides = array<i32>} : memref<1x1x8x1xf32, #tpu.memory_space<vmem>>, vector<1x1x8x1xf32>,
    %c0_39 = arith.constant 0 : index
    %c0_40 = arith.constant 0 : index
    %c0_41 = arith.constant 0 : index
    %c0_42 = arith.constant 0 : index
    %40 = vector.load %arg13[%c0_39, %c0_40, %c0_41, %c0_42] : memref<1x1x8x1xf32, #tpu.memory_space<vmem>>, vector<1x1x8x1xf32>
    %41 = vector.shape_cast %40 : vector<1x1x8x1xf32> to vector<8x1xf32>
    %cst_43 = arith.constant dense<0.000000e+00> : vector<8xf32>
    %42 = vector.multi_reduction <add>, %16, %cst_43 [1] : vector<8x128xf32> to vector<8xf32>
    %43 = vector.shape_cast %42 : vector<8xf32> to vector<8x1xf32>
    %44 = arith.addf %41, %43 : vector<8x1xf32>
    %c0_44 = arith.constant 0 : index
    %c0_45 = arith.constant 0 : index
    %c0_46 = arith.constant 0 : index
    %c0_47 = arith.constant 0 : index
    %45 = vector.load %arg13[%c0_44, %c0_45, %c0_46, %c0_47] : memref<1x1x8x1xf32, #tpu.memory_space<vmem>>, vector<1x1x8x1xf32>
    %46 = vector.shape_cast %45 : vector<1x1x8x1xf32> to vector<8x1xf32>
    %47 = vector.shape_cast %44 : vector<8x1xf32> to vector<1x1x8x1xf32>
    tpu.vector_store %arg13[%c0_44, %c0_45, %c0_46, %c0_47], %47 {strides = array<i32>} : memref<1x1x8x1xf32, #tpu.memory_space<vmem>>, vector<1x1x8x1xf32>,
    %c0_48 = arith.constant 0 : index
    %c0_49 = arith.constant 0 : index
    %c0_50 = arith.constant 0 : index
    %c0_51 = arith.constant 0 : index
    %48 = vector.load %arg14[%c0_48, %c0_49, %c0_50, %c0_51] : memref<1x1x8x1xf32, #tpu.memory_space<vmem>>, vector<1x1x8x1xf32>
    %49 = vector.shape_cast %48 : vector<1x1x8x1xf32> to vector<8x1xf32>
    %50 = arith.mulf %16, %16 : vector<8x128xf32>
    %cst_52 = arith.constant dense<0.000000e+00> : vector<8xf32>
    %51 = vector.multi_reduction <add>, %50, %cst_52 [1] : vector<8x128xf32> to vector<8xf32>
    %52 = vector.shape_cast %51 : vector<8xf32> to vector<8x1xf32>
    %53 = arith.addf %49, %52 : vector<8x1xf32>
    %c0_53 = arith.constant 0 : index
    %c0_54 = arith.constant 0 : index
    %c0_55 = arith.constant 0 : index
    %c0_56 = arith.constant 0 : index
    %54 = vector.load %arg14[%c0_53, %c0_54, %c0_55, %c0_56] : memref<1x1x8x1xf32, #tpu.memory_space<vmem>>, vector<1x1x8x1xf32>
    %55 = vector.shape_cast %54 : vector<1x1x8x1xf32> to vector<8x1xf32>
    %56 = vector.shape_cast %53 : vector<8x1xf32> to vector<1x1x8x1xf32>
    tpu.vector_store %arg14[%c0_53, %c0_54, %c0_55, %c0_56], %56 {strides = array<i32>} : memref<1x1x8x1xf32, #tpu.memory_space<vmem>>, vector<1x1x8x1xf32>,
    return
  }
  func.func @transform_0(%arg0: i32, %arg1: i32, %arg2: i32) -> (i32, i32, i32) {
    %c2_i32 = arith.constant 2 : i32
    %0 = arith.muli %arg1, %c2_i32 : i32
    %1 = arith.addi %0, %arg2 : i32
    %c0_i32 = arith.constant 0 : i32
    %c0_i32_0 = arith.constant 0 : i32
    return %arg0, %c0_i32, %1 : i32, i32, i32
  }
  func.func @transform_1(%arg0: i32, %arg1: i32, %arg2: i32) -> (i32, i32, i32) {
    %c2_i32 = arith.constant 2 : i32
    %0 = arith.muli %arg1, %c2_i32 : i32
    %1 = arith.addi %0, %arg2 : i32
    %c0_i32 = arith.constant 0 : i32
    %c0_i32_0 = arith.constant 0 : i32
    return %arg0, %c0_i32, %1 : i32, i32, i32
  }
  func.func @transform_2(%arg0: i32, %arg1: i32, %arg2: i32) -> (i32, i32) {
    %c0_i32 = arith.constant 0 : i32
    %c0_i32_0 = arith.constant 0 : i32
    %c0_i32_1 = arith.constant 0 : i32
    return %c0_i32, %c0_i32_0 : i32, i32
  }
  func.func @transform_3(%arg0: i32, %arg1: i32, %arg2: i32) -> (i32, i32) {
    %c0_i32 = arith.constant 0 : i32
    %c0_i32_0 = arith.constant 0 : i32
    %c0_i32_1 = arith.constant 0 : i32
    return %c0_i32, %c0_i32_0 : i32, i32
  }
  func.func @transform_4(%arg0: i32, %arg1: i32, %arg2: i32) -> (i32, i32) {
    %c0_i32 = arith.constant 0 : i32
    %c0_i32_0 = arith.constant 0 : i32
    %c0_i32_1 = arith.constant 0 : i32
    return %c0_i32, %c0_i32_0 : i32, i32
  }
  func.func @transform_5(%arg0: i32, %arg1: i32, %arg2: i32) -> (i32, i32) {
    %c0_i32 = arith.constant 0 : i32
    %c0_i32_0 = arith.constant 0 : i32
    %c0_i32_1 = arith.constant 0 : i32
    return %c0_i32, %c0_i32_0 : i32, i32
  }
  func.func @transform_6(%arg0: i32, %arg1: i32, %arg2: i32) -> (i32, i32, i32) {
    %c2_i32 = arith.constant 2 : i32
    %0 = arith.muli %arg1, %c2_i32 : i32
    %1 = arith.addi %0, %arg2 : i32
    %c0_i32 = arith.constant 0 : i32
    %c0_i32_0 = arith.constant 0 : i32
    return %arg0, %c0_i32, %1 : i32, i32, i32
  }
  func.func @transform_7(%arg0: i32, %arg1: i32, %arg2: i32) -> (i32, i32, i32) {
    %c2_i32 = arith.constant 2 : i32
    %0 = arith.muli %arg1, %c2_i32 : i32
    %1 = arith.addi %0, %arg2 : i32
    %c0_i32 = arith.constant 0 : i32
    %c0_i32_0 = arith.constant 0 : i32
    return %arg0, %c0_i32, %1 : i32, i32, i32
  }
  func.func @transform_8(%arg0: i32, %arg1: i32, %arg2: i32) -> (i32, i32, i32, i32) {
    %c0_i32 = arith.constant 0 : i32
    %c0_i32_0 = arith.constant 0 : i32
    %c0_i32_1 = arith.constant 0 : i32
    return %arg0, %arg1, %c0_i32, %c0_i32_0 : i32, i32, i32, i32
  }
  func.func @transform_9(%arg0: i32, %arg1: i32, %arg2: i32) -> (i32, i32, i32, i32) {
    %c0_i32 = arith.constant 0 : i32
    %c0_i32_0 = arith.constant 0 : i32
    %c0_i32_1 = arith.constant 0 : i32
    return %arg0, %arg1, %c0_i32, %c0_i32_0 : i32, i32, i32, i32
  }
  func.func @transform_10(%arg0: i32, %arg1: i32, %arg2: i32) -> (i32, i32, i32, i32) {
    %c0_i32 = arith.constant 0 : i32
    %c0_i32_0 = arith.constant 0 : i32
    %c0_i32_1 = arith.constant 0 : i32
    return %arg0, %arg1, %c0_i32, %c0_i32_0 : i32, i32, i32, i32
  }
  func.func @transform_11(%arg0: i32, %arg1: i32, %arg2: i32) -> (i32, i32, i32, i32) {
    %c0_i32 = arith.constant 0 : i32
    %c0_i32_0 = arith.constant 0 : i32
    %c0_i32_1 = arith.constant 0 : i32
    return %arg0, %arg1, %c0_i32, %c0_i32_0 : i32, i32, i32, i32
  }
}

module attributes {stable_mosaic.version = 11 : i64} {
  func.func @_apply_kernel(%arg0: i32, %arg1: i32, %arg2: memref<1x16x128xf32, #tpu.memory_space<vmem>>, %arg3: memref<1x1x128xf32, #tpu.memory_space<vmem>>, %arg4: memref<2xf32, #tpu.memory_space<smem>>, %arg5: memref<2xf32, #tpu.memory_space<smem>>, %arg6: memref<1x16x128xf32, #tpu.memory_space<vmem>>) attributes {dimension_semantics = [#tpu.dimension_semantics<parallel>, #tpu.dimension_semantics<parallel>], iteration_bounds = array<i64: 2, 4>, scalar_prefetch = 0 : i64, scratch_operands = 0 : i64, tpu.core_type = #tpu.core_type<tc>, window_params = [{transform_indices = @transform_0, window_bounds = array<i64: 1, 16, 128>}, {transform_indices = @transform_1, window_bounds = array<i64: 1, 1, 128>}, {transform_indices = @transform_2, window_bounds = array<i64: 2>}, {transform_indices = @transform_3, window_bounds = array<i64: 2>}, {transform_indices = @transform_4, window_bounds = array<i64: 1, 16, 128>}]} {
    %c0 = arith.constant 0 : index
    %c0_0 = arith.constant 0 : index
    %c0_1 = arith.constant 0 : index
    %0 = vector.load %arg3[%c0, %c0_0, %c0_1] : memref<1x1x128xf32, #tpu.memory_space<vmem>>, vector<1x1x128xf32>
    %1 = vector.shape_cast %0 : vector<1x1x128xf32> to vector<1x128xf32>
    %2 = arith.index_cast %arg0 : i32 to index
    %3 = memref.load %arg4[%2] : memref<2xf32, #tpu.memory_space<smem>>
    %4 = vector.broadcast %3 : f32 to vector<1x128xf32>
    %5 = arith.mulf %1, %4 : vector<1x128xf32>
    %6 = arith.index_cast %arg0 : i32 to index
    %7 = memref.load %arg5[%6] : memref<2xf32, #tpu.memory_space<smem>>
    %8 = vector.broadcast %7 : f32 to vector<1x128xf32>
    %9 = arith.addf %5, %8 : vector<1x128xf32>
    %10 = arith.negf %9 : vector<1x128xf32>
    %11 = math.exp %10 : vector<1x128xf32>
    %cst = arith.constant 1.000000e+00 : f32
    %12 = vector.broadcast %cst : f32 to vector<1x128xf32>
    %13 = arith.addf %12, %11 : vector<1x128xf32>
    %14 = arith.divf %12, %13 : vector<1x128xf32>
    %c0_2 = arith.constant 0 : index
    %c0_3 = arith.constant 0 : index
    %c0_4 = arith.constant 0 : index
    %15 = vector.load %arg2[%c0_2, %c0_3, %c0_4] : memref<1x16x128xf32, #tpu.memory_space<vmem>>, vector<1x16x128xf32>
    %16 = vector.shape_cast %15 : vector<1x16x128xf32> to vector<16x128xf32>
    %17 = vector.broadcast %14 : vector<1x128xf32> to vector<16x128xf32>
    %18 = arith.mulf %16, %17 : vector<16x128xf32>
    %c0_5 = arith.constant 0 : index
    %c0_6 = arith.constant 0 : index
    %c0_7 = arith.constant 0 : index
    %19 = vector.load %arg6[%c0_5, %c0_6, %c0_7] : memref<1x16x128xf32, #tpu.memory_space<vmem>>, vector<1x16x128xf32>
    %20 = vector.shape_cast %19 : vector<1x16x128xf32> to vector<16x128xf32>
    %21 = vector.shape_cast %18 : vector<16x128xf32> to vector<1x16x128xf32>
    tpu.vector_store %arg6[%c0_5, %c0_6, %c0_7], %21 {strides = array<i32>} : memref<1x16x128xf32, #tpu.memory_space<vmem>>, vector<1x16x128xf32>,
    return
  }
  func.func @transform_0(%arg0: i32, %arg1: i32) -> (i32, i32, i32) {
    %c0_i32 = arith.constant 0 : i32
    %c0_i32_0 = arith.constant 0 : i32
    return %arg0, %c0_i32, %arg1 : i32, i32, i32
  }
  func.func @transform_1(%arg0: i32, %arg1: i32) -> (i32, i32, i32) {
    %c0_i32 = arith.constant 0 : i32
    %c0_i32_0 = arith.constant 0 : i32
    return %arg0, %c0_i32, %arg1 : i32, i32, i32
  }
  func.func @transform_2(%arg0: i32, %arg1: i32) -> i32 {
    %c0_i32 = arith.constant 0 : i32
    %c0_i32_0 = arith.constant 0 : i32
    return %c0_i32 : i32
  }
  func.func @transform_3(%arg0: i32, %arg1: i32) -> i32 {
    %c0_i32 = arith.constant 0 : i32
    %c0_i32_0 = arith.constant 0 : i32
    return %c0_i32 : i32
  }
  func.func @transform_4(%arg0: i32, %arg1: i32) -> (i32, i32, i32) {
    %c0_i32 = arith.constant 0 : i32
    %c0_i32_0 = arith.constant 0 : i32
    return %arg0, %c0_i32, %arg1 : i32, i32, i32
  }
}

module attributes {stable_mosaic.version = 11 : i64} {
  func.func @_psi_kernel(%arg0: i32, %arg1: i32, %arg2: i32, %arg3: memref<1x8x128xf32, #tpu.memory_space<vmem>>, %arg4: memref<1x8x128xf32, #tpu.memory_space<vmem>>, %arg5: memref<1x8x1xf32, #tpu.memory_space<vmem>>, %arg6: memref<1x8x1xf32, #tpu.memory_space<vmem>>, %arg7: memref<1x8x1xf32, #tpu.memory_space<vmem>>, %arg8: memref<8x1xf32, #tpu.memory_space<vmem>>, %arg9: memref<1xf32, #tpu.memory_space<smem>>, %arg10: memref<1x1x128xf32, #tpu.memory_space<vmem>>, %arg11: memref<1x1x1x1xf32, #tpu.memory_space<vmem>>, %arg12: memref<1x1x1x1xf32, #tpu.memory_space<vmem>>) attributes {dimension_semantics = [#tpu.dimension_semantics<parallel>, #tpu.dimension_semantics<parallel>, #tpu.dimension_semantics<arbitrary>], iteration_bounds = array<i64: 2, 2, 2>, scalar_prefetch = 0 : i64, scratch_operands = 0 : i64, tpu.core_type = #tpu.core_type<tc>, window_params = [{transform_indices = @transform_0, window_bounds = array<i64: 1, 8, 128>}, {transform_indices = @transform_1, window_bounds = array<i64: 1, 8, 128>}, {transform_indices = @transform_2, window_bounds = array<i64: 1, 8, 1>}, {transform_indices = @transform_3, window_bounds = array<i64: 1, 8, 1>}, {transform_indices = @transform_4, window_bounds = array<i64: 1, 8, 1>}, {pipeline_mode = #tpu.pipeline_mode<synchronous>, transform_indices = @transform_5, window_bounds = array<i64: 8, 1>}, {transform_indices = @transform_6, window_bounds = array<i64: 1>}, {transform_indices = @transform_7, window_bounds = array<i64: 1, 1, 128>}, {transform_indices = @transform_8, window_bounds = array<i64: 1, 1, 1, 1>}, {transform_indices = @transform_9, window_bounds = array<i64: 1, 1, 1, 1>}]} {
    %c0_i32 = arith.constant 0 : i32
    %0 = arith.cmpi eq, %arg2, %c0_i32 : i32
    %1 = arith.extui %0 : i1 to i32
    %c0_i32_0 = arith.constant 0 : i32
    %2 = arith.cmpi ne, %1, %c0_i32_0 : i32
    scf.if %2 {
      %cst_40 = arith.constant 0.000000e+00 : f32
      %50 = vector.broadcast %cst_40 : f32 to vector<1x1x1x1xf32>
      %c0_41 = arith.constant 0 : index
      %c0_42 = arith.constant 0 : index
      %c0_43 = arith.constant 0 : index
      %c0_44 = arith.constant 0 : index
      %51 = vector.load %arg11[%c0_41, %c0_42, %c0_43, %c0_44] : memref<1x1x1x1xf32, #tpu.memory_space<vmem>>, vector<1x1x1x1xf32>
      tpu.vector_store %arg11[%c0_41, %c0_42, %c0_43, %c0_44], %50 {strides = array<i32>} : memref<1x1x1x1xf32, #tpu.memory_space<vmem>>, vector<1x1x1x1xf32>,
      %cst_45 = arith.constant 0.000000e+00 : f32
      %52 = vector.broadcast %cst_45 : f32 to vector<1x1x1x1xf32>
      %c0_46 = arith.constant 0 : index
      %c0_47 = arith.constant 0 : index
      %c0_48 = arith.constant 0 : index
      %c0_49 = arith.constant 0 : index
      %53 = vector.load %arg12[%c0_46, %c0_47, %c0_48, %c0_49] : memref<1x1x1x1xf32, #tpu.memory_space<vmem>>, vector<1x1x1x1xf32>
      tpu.vector_store %arg12[%c0_46, %c0_47, %c0_48, %c0_49], %52 {strides = array<i32>} : memref<1x1x1x1xf32, #tpu.memory_space<vmem>>, vector<1x1x1x1xf32>,
    } else {
    }
    %c0 = arith.constant 0 : index
    %c0_1 = arith.constant 0 : index
    %c0_2 = arith.constant 0 : index
    %3 = vector.load %arg3[%c0, %c0_1, %c0_2] : memref<1x8x128xf32, #tpu.memory_space<vmem>>, vector<1x8x128xf32>
    %4 = vector.shape_cast %3 : vector<1x8x128xf32> to vector<8x128xf32>
    %c0_3 = arith.constant 0 : index
    %c0_4 = arith.constant 0 : index
    %c0_5 = arith.constant 0 : index
    %5 = vector.load %arg4[%c0_3, %c0_4, %c0_5] : memref<1x8x128xf32, #tpu.memory_space<vmem>>, vector<1x8x128xf32>
    %6 = vector.shape_cast %5 : vector<1x8x128xf32> to vector<8x128xf32>
    %c0_6 = arith.constant 0 : index
    %c0_7 = arith.constant 0 : index
    %c0_8 = arith.constant 0 : index
    %7 = vector.load %arg5[%c0_6, %c0_7, %c0_8] : memref<1x8x1xf32, #tpu.memory_space<vmem>>, vector<1x8x1xf32>
    %8 = vector.shape_cast %7 : vector<1x8x1xf32> to vector<8x1xf32>
    %9 = vector.broadcast %8 : vector<8x1xf32> to vector<8x128xf32>
    %10 = arith.mulf %4, %9 : vector<8x128xf32>
    %c0_9 = arith.constant 0 : index
    %c0_10 = arith.constant 0 : index
    %c0_11 = arith.constant 0 : index
    %11 = vector.load %arg6[%c0_9, %c0_10, %c0_11] : memref<1x8x1xf32, #tpu.memory_space<vmem>>, vector<1x8x1xf32>
    %12 = vector.shape_cast %11 : vector<1x8x1xf32> to vector<8x1xf32>
    %13 = vector.broadcast %12 : vector<8x1xf32> to vector<8x128xf32>
    %14 = arith.mulf %6, %13 : vector<8x128xf32>
    %15 = arith.addf %10, %14 : vector<8x128xf32>
    %c0_12 = arith.constant 0 : index
    %c0_13 = arith.constant 0 : index
    %c0_14 = arith.constant 0 : index
    %16 = vector.load %arg7[%c0_12, %c0_13, %c0_14] : memref<1x8x1xf32, #tpu.memory_space<vmem>>, vector<1x8x1xf32>
    %17 = vector.shape_cast %16 : vector<1x8x1xf32> to vector<8x1xf32>
    %18 = vector.broadcast %17 : vector<8x1xf32> to vector<8x128xf32>
    %19 = arith.addf %15, %18 : vector<8x128xf32>
    %cst = arith.constant 0.000000e+00 : f32
    %20 = vector.broadcast %cst : f32 to vector<8x128xf32>
    %21 = arith.maximumf %19, %20 : vector<8x128xf32>
    %c0_15 = arith.constant 0 : index
    %c0_16 = arith.constant 0 : index
    %22 = vector.load %arg8[%c0_15, %c0_16] : memref<8x1xf32, #tpu.memory_space<vmem>>, vector<8x1xf32>
    %23 = vector.broadcast %22 : vector<8x1xf32> to vector<8x128xf32>
    %24 = arith.mulf %21, %23 : vector<8x128xf32>
    %cst_17 = arith.constant dense<0.000000e+00> : vector<128xf32>
    %25 = vector.multi_reduction <add>, %24, %cst_17 [0] : vector<8x128xf32> to vector<128xf32>
    %26 = vector.shape_cast %25 : vector<128xf32> to vector<1x128xf32>
    %c0_18 = arith.constant 0 : index
    %27 = memref.load %arg9[%c0_18] : memref<1xf32, #tpu.memory_space<smem>>
    %28 = vector.broadcast %27 : f32 to vector<1x128xf32>
    %29 = arith.addf %26, %28 : vector<1x128xf32>
    %c0_19 = arith.constant 0 : index
    %c0_20 = arith.constant 0 : index
    %c0_21 = arith.constant 0 : index
    %30 = vector.load %arg10[%c0_19, %c0_20, %c0_21] : memref<1x1x128xf32, #tpu.memory_space<vmem>>, vector<1x1x128xf32>
    %31 = vector.shape_cast %30 : vector<1x1x128xf32> to vector<1x128xf32>
    %32 = vector.shape_cast %29 : vector<1x128xf32> to vector<1x1x128xf32>
    tpu.vector_store %arg10[%c0_19, %c0_20, %c0_21], %32 {strides = array<i32>} : memref<1x1x128xf32, #tpu.memory_space<vmem>>, vector<1x1x128xf32>,
    %c0_22 = arith.constant 0 : index
    %c0_23 = arith.constant 0 : index
    %c0_24 = arith.constant 0 : index
    %c0_25 = arith.constant 0 : index
    %33 = vector.load %arg11[%c0_22, %c0_23, %c0_24, %c0_25] : memref<1x1x1x1xf32, #tpu.memory_space<vmem>>, vector<1x1x1x1xf32>
    %34 = vector.shape_cast %33 : vector<1x1x1x1xf32> to vector<1x1xf32>
    %cst_26 = arith.constant dense<0.000000e+00> : vector<1xf32>
    %35 = vector.multi_reduction <add>, %29, %cst_26 [1] : vector<1x128xf32> to vector<1xf32>
    %36 = vector.shape_cast %35 : vector<1xf32> to vector<1x1xf32>
    %37 = arith.addf %34, %36 : vector<1x1xf32>
    %c0_27 = arith.constant 0 : index
    %c0_28 = arith.constant 0 : index
    %c0_29 = arith.constant 0 : index
    %c0_30 = arith.constant 0 : index
    %38 = vector.load %arg11[%c0_27, %c0_28, %c0_29, %c0_30] : memref<1x1x1x1xf32, #tpu.memory_space<vmem>>, vector<1x1x1x1xf32>
    %39 = vector.shape_cast %38 : vector<1x1x1x1xf32> to vector<1x1xf32>
    %40 = vector.shape_cast %37 : vector<1x1xf32> to vector<1x1x1x1xf32>
    tpu.vector_store %arg11[%c0_27, %c0_28, %c0_29, %c0_30], %40 {strides = array<i32>} : memref<1x1x1x1xf32, #tpu.memory_space<vmem>>, vector<1x1x1x1xf32>,
    %c0_31 = arith.constant 0 : index
    %c0_32 = arith.constant 0 : index
    %c0_33 = arith.constant 0 : index
    %c0_34 = arith.constant 0 : index
    %41 = vector.load %arg12[%c0_31, %c0_32, %c0_33, %c0_34] : memref<1x1x1x1xf32, #tpu.memory_space<vmem>>, vector<1x1x1x1xf32>
    %42 = vector.shape_cast %41 : vector<1x1x1x1xf32> to vector<1x1xf32>
    %43 = arith.mulf %29, %29 : vector<1x128xf32>
    %cst_35 = arith.constant dense<0.000000e+00> : vector<1xf32>
    %44 = vector.multi_reduction <add>, %43, %cst_35 [1] : vector<1x128xf32> to vector<1xf32>
    %45 = vector.shape_cast %44 : vector<1xf32> to vector<1x1xf32>
    %46 = arith.addf %42, %45 : vector<1x1xf32>
    %c0_36 = arith.constant 0 : index
    %c0_37 = arith.constant 0 : index
    %c0_38 = arith.constant 0 : index
    %c0_39 = arith.constant 0 : index
    %47 = vector.load %arg12[%c0_36, %c0_37, %c0_38, %c0_39] : memref<1x1x1x1xf32, #tpu.memory_space<vmem>>, vector<1x1x1x1xf32>
    %48 = vector.shape_cast %47 : vector<1x1x1x1xf32> to vector<1x1xf32>
    %49 = vector.shape_cast %46 : vector<1x1xf32> to vector<1x1x1x1xf32>
    tpu.vector_store %arg12[%c0_36, %c0_37, %c0_38, %c0_39], %49 {strides = array<i32>} : memref<1x1x1x1xf32, #tpu.memory_space<vmem>>, vector<1x1x1x1xf32>,
    return
  }
  func.func @transform_0(%arg0: i32, %arg1: i32, %arg2: i32) -> (i32, i32, i32) {
    %c2_i32 = arith.constant 2 : i32
    %0 = arith.muli %arg1, %c2_i32 : i32
    %1 = arith.addi %0, %arg2 : i32
    %c0_i32 = arith.constant 0 : i32
    %c0_i32_0 = arith.constant 0 : i32
    return %arg0, %c0_i32, %1 : i32, i32, i32
  }
  func.func @transform_1(%arg0: i32, %arg1: i32, %arg2: i32) -> (i32, i32, i32) {
    %c2_i32 = arith.constant 2 : i32
    %0 = arith.muli %arg1, %c2_i32 : i32
    %1 = arith.addi %0, %arg2 : i32
    %c0_i32 = arith.constant 0 : i32
    %c0_i32_0 = arith.constant 0 : i32
    return %arg0, %c0_i32, %1 : i32, i32, i32
  }
  func.func @transform_2(%arg0: i32, %arg1: i32, %arg2: i32) -> (i32, i32, i32) {
    %c0_i32 = arith.constant 0 : i32
    %c0_i32_0 = arith.constant 0 : i32
    %c0_i32_1 = arith.constant 0 : i32
    return %arg0, %c0_i32, %c0_i32_0 : i32, i32, i32
  }
  func.func @transform_3(%arg0: i32, %arg1: i32, %arg2: i32) -> (i32, i32, i32) {
    %c0_i32 = arith.constant 0 : i32
    %c0_i32_0 = arith.constant 0 : i32
    %c0_i32_1 = arith.constant 0 : i32
    return %arg0, %c0_i32, %c0_i32_0 : i32, i32, i32
  }
  func.func @transform_4(%arg0: i32, %arg1: i32, %arg2: i32) -> (i32, i32, i32) {
    %c0_i32 = arith.constant 0 : i32
    %c0_i32_0 = arith.constant 0 : i32
    %c0_i32_1 = arith.constant 0 : i32
    return %arg0, %c0_i32, %c0_i32_0 : i32, i32, i32
  }
  func.func @transform_5(%arg0: i32, %arg1: i32, %arg2: i32) -> (i32, i32) {
    %c0_i32 = arith.constant 0 : i32
    %c0_i32_0 = arith.constant 0 : i32
    %c0_i32_1 = arith.constant 0 : i32
    return %c0_i32, %c0_i32_0 : i32, i32
  }
  func.func @transform_6(%arg0: i32, %arg1: i32, %arg2: i32) -> i32 {
    %c0_i32 = arith.constant 0 : i32
    %c0_i32_0 = arith.constant 0 : i32
    return %c0_i32 : i32
  }
  func.func @transform_7(%arg0: i32, %arg1: i32, %arg2: i32) -> (i32, i32, i32) {
    %c2_i32 = arith.constant 2 : i32
    %0 = arith.muli %arg1, %c2_i32 : i32
    %1 = arith.addi %0, %arg2 : i32
    %c0_i32 = arith.constant 0 : i32
    %c0_i32_0 = arith.constant 0 : i32
    return %arg0, %c0_i32, %1 : i32, i32, i32
  }
  func.func @transform_8(%arg0: i32, %arg1: i32, %arg2: i32) -> (i32, i32, i32, i32) {
    %c0_i32 = arith.constant 0 : i32
    %c0_i32_0 = arith.constant 0 : i32
    %c0_i32_1 = arith.constant 0 : i32
    return %arg0, %arg1, %c0_i32, %c0_i32_0 : i32, i32, i32, i32
  }
  func.func @transform_9(%arg0: i32, %arg1: i32, %arg2: i32) -> (i32, i32, i32, i32) {
    %c0_i32 = arith.constant 0 : i32
    %c0_i32_0 = arith.constant 0 : i32
    %c0_i32_1 = arith.constant 0 : i32
    return %arg0, %arg1, %c0_i32, %c0_i32_0 : i32, i32, i32, i32
  }
}

</mosaic_0001>

<bundles_post_ra>
// kernel: attention_block.4
= control target key start
LH: loop header
LB: loop body
LE: loop exit
PB: predicated region body
PF: predicated region fallthrough
CT: control target
= control target key end

     0   :  { %s1015_s11 = smov 0   ;;  %s1017_s12 = smov 0   ;;  %s1138_s0 = inlined_call_operand.vmem [shape: f32[2,8,512], index: 0, kind: input, shape index: {}]   ;;  %s1139_s1 = inlined_call_operand.vmem [shape: f32[2,8,512], index: 1, kind: input, shape index: {}]   ;;  %s1140_s2 = inlined_call_operand.vmem [shape: f32[2,8,1], index: 2, kind: input, shape index: {}]   ;;  %s1141_s3 = inlined_call_operand.vmem [shape: f32[2,8,1], index: 3, kind: input, shape index: {}]   ;;  %s1142_s4 = inlined_call_operand.vmem [shape: f32[2,8,1], index: 4, kind: input, shape index: {}]   ;;  %s1143_s5 = inlined_call_operand.vmem [shape: f32[8,1], index: 5, kind: input, shape index: {}]   ;;  %s1144_s6 = inlined_call_operand.<no memory space> [shape: f32[1], index: 6, kind: input, shape index: {}]   ;;  %s1145_s7 = inlined_call_operand.vmem [shape: f32[2,1,512], index: 7, kind: output, shape index: {0}]   ;;  %s1146_s8 = inlined_call_operand.vmem [shape: f32[2,2,1,1], index: 8, kind: output, shape index: {1}]   ;;  %s1147_s9 = inlined_call_operand.vmem [shape: f32[2,2,1,1], index: 9, kind: output, shape index: {2}]  }
   0x1   :  { %1151 = sst [smem:[#allocation9_spill]] %s1140_s2  ;;  %s1019_s13 = smov 0  }
   0x2   :  { %1152 = sst [smem:[#allocation10_spill]] %s1141_s3  ;;  %s1021_s14 = smov 0  }
   0x3   :  { %1153 = sst [smem:[#allocation11_spill]] %s1142_s4  ;;  %s1023_s15 = smov 0  }
   0x4   :  { %15 = sst [smem:[#allocation2]] %s1144_s6  ;;  %s1025_s16 = smov 0  }
   0x5   :  { %s1027_s17 = smov 0  }
   0x6 LB: > { %1154 = sst [smem:[#allocation3_spill]] %s946_s14  ;;  %s33_s6 = sadd.s32 1, %s946_s14  ;;  %s958_s17 = sphi %s1027_s17, %s21_s17   ;;  %s954_s16 = sphi %s1025_s16, %s1168_s16   ;;  %s950_s15 = sphi %s1023_s15, %s1167_s15   ;;  %s946_s14 = sphi %s1021_s14, %s1166_s14   ;;  %s942_s13 = sphi %s1019_s13, %s1165_s13   ;;  %s938_s12 = sphi %s1017_s12, %s1164_s12   ;;  %s934_s11 = sphi %s1015_s11, %s1163_s11  }
   0x7   : > { %1155 = sst [smem:[#allocation4_spill]] %s950_s15  ;;  %p34_p0 = scmp.ge.s32.totalorder %s33_s6, 2 }
   0x8   : > { %1156 = sst [smem:[#allocation5_spill]] %s954_s16  ;;  %s36_s18 = sadd.s32 1, %s950_s15 }
   0x9   : > { %p827_p1 = scmp.ge.s32.totalorder %s958_s17, 1  ;;  %p385_p2 = scmp.lt.s32.totalorder %s958_s17, 9 }
   0xa   : > { %s1170_s6 = smov (%p34_p0, %s33_s6), 0  ;;  %s1172_s18 = smov (!%p34_p0, %s36_s18), %s950_s15 }
   0xb   : > { %1157 = sst [smem:[#allocation6_spill]] %s1170_s6  ;;  %p386_p3 = pnand %p827_p1, %p385_p2 }
   0xc   : > { %p38_p4 = scmp.ge.s32.totalorder %s1172_s18, 2  ;;  %s40_s19 = sadd.s32 1, %s954_s16 }
   0xd   : > { %389 = sbr.rel (%p386_p3) target bundleno = 341 (0x155), region = 48  ;;  %s828_s20 = sshll.u32 (!%p386_p3), %s938_s12, 1 }
   0xe   : > { %s1174_s18 = smov (%p38_p4, %s1172_s18), 0  ;;  %s1176_s19 = smov (!%p38_p4, %s40_s19), %s954_s16 }
   0xf   : > { %1158 = sst [smem:[#allocation7_spill]] %s1174_s18  ;;  %p42_p5 = scmp.ge.s32.totalorder %s1176_s19, 2 }
  0x10   : > { %p468_p6 = scmp.lt.s32.totalorder (!%p386_p3), %s942_s13, 1  ;;  %s467_s21 = sadd.s32 (!%p386_p3), %s934_s11, %s828_s20 }
  0x11   : > { %s1178_s19 = smov (%p42_p5, %s1176_s19), 0  ;;  %p470_p7 = scmp.lt.s32.totalorder (!%p386_p3), %s467_s21, 3 }
  0x12   : > { %1159 = sst [smem:[#allocation8_spill]] %s1178_s19  ;;  %p515_p8 = scmp.lt.s32.totalorder (!%p386_p3), %s938_s12, 1 }
  0x13   : > { %s1160_s2 = sld [smem:[#allocation9_spill]] (!%p386_p3)  ;;  %s1161_s3 = sld [smem:[#allocation10_spill]] (!%p386_p3) }
  0x14   : > { %s1180_s13 = smov (!%p468_p6, %s942_s13), 1  ;;  %s1182_s21 = smov (!%p470_p7, %s467_s21), 3 }
  0x15   : > { %s829_s22 = sshll.u32 %s1180_s13, 2  ;;  %s1064_s23 = sshll.u32 %s1180_s13, 3 }
  0x16   : > { %s1074_s30 = sadd.s32 %s829_s22, %s1182_s21  ;;  %s1162_s4 = sld [smem:[#allocation11_spill]] }
  0x17   : > { %s830_s18 = sshll.u32 %s1074_s30, 3  ;;  %s510_s15 = scalar_lea.vmem %s1145_s7, %s1074_s30 }
  0x18   : > { %s475_s25 = scalar_lea.vmem %s1138_s0, %s830_s18  ;;  %s487_s21 = scalar_lea.vmem %s1139_s1, %s830_s18 }
  0x19   : > { %s493_s26 = scalar_lea.vmem %s1160_s2, %s1064_s23  ;;  %s497_s29 = scalar_lea.vmem %s1161_s3, %s1064_s23 }
  0x1a   : > { %s1184_s12 = smov (!%p515_p8, %s938_s12), 1  ;;  %s839_s22 = sshll.u32 %s1180_s13, 1 }
  0x1b   : > { %s518_s28 = sadd.s32 %s839_s22, %s1184_s12  ;;  %p841_p9 = scmp.ne.s32.totalorder %s934_s11, 0 }
  0x1c   : > { %s501_s19 = scalar_lea.vmem %s1162_s4, %s1064_s23  ;;  %s1095_s23 = scalar_lea.vmem %s1146_s8, %s518_s28  ;;  %vm531_vm0 = vcmask (!%p841_p9), 0   ;;  %v960_v0 = vmov (!%p841_p9), 0.0  }
  0x1d   : > { %s1100_s16 = scalar_lea.vmem %s1147_s9, %s518_s28  ;;  %530 = sbr.rel (%p841_p9) target bundleno = 36 (0x24), region = 52  ;;  %532 = vst.msk [vmem:[%s1095_s23] sm:$0x1] (!%p841_p9), %vm531_vm0, %v960_v0 }
  0x1e   : > { %533 = vst.msk [vmem:[%s1100_s16] sm:$0x1] (!%p841_p9), %vm531_vm0, %v960_v0 }
  0x24 PF: > { %v536_v1 = vld [vmem:[%s493_s26] sm:$0xff]  ;;  %v961_v3 = vmov 0   ;;  %s572_s4 = sld [smem:[#allocation2]]  ;;  %vm580_vm1 = vcmask 0  }
  0x25   : > { %v551_v2 = vld [vmem:[%s501_s19] sm:$0xff]  ;;  %902 = vset.pattern.permute.xlu0 %v961_v3  ;;  %903 = vset.pattern.permute.xlu1 %v961_v3 }
  0x26   : > { %539 = vperm.xlu0 %902, %v536_v1   ;;  %554 = vperm.xlu1 %903, %v551_v2   ;;  %v543_v4 = vld [vmem:[%s497_s29] sm:$0xff] }
  0x27   : > { %v559_v5 = vld [vmem:[%s1143_s5] sm:$0xff] }
  0x28   : > { %v534_v7 = vld [vmem:[%s475_s25] sm:$0xff] }
  0x29   : > { %v535_v8 = vld [vmem:[%s487_s21] sm:$0xff] }
  0x2a   : > { %546 = vperm.xlu0 %902, %v543_v4   ;;  %562 = vperm.xlu1 %903, %v559_v5   ;;  %v573_v23 = vstv %s572_s4  ;;  %v576_v27 = vld [vmem:[%s1095_s23] sm:$0x1] }
  0x2b   : > { %v582_v29 = vld [vmem:[%s1100_s16] sm:$0x1] }
  0xa5   : > { %v540_v6 = vpop.permute.xlu0 %539  ;;  %v555_v12 = vpop.permute.xlu1 %554 }
  0xa6   : > { %v542_v10 = vmul.f32 %v540_v6, %v534_v7 }
  0xa9   : > { %v547_v9 = vpop.permute.xlu0 %546  ;;  %v563_v16 = vpop.permute.xlu1 %562 }
  0xaa   : > { %v549_v11 = vmul.f32 %v547_v9, %v535_v8 }
  0xac   : > { %v550_v13 = vadd.f32 %v549_v11, %v542_v10 }
  0xae   : > { %v557_v14 = vadd.f32 %v555_v12, %v550_v13 }
  0xb0   : > { %v558_v15 = vmax.f32 %v557_v14, 0.0 }
  0xb2   : > { %v565_v17 = vmul.f32 %v563_v16, %v558_v15 }
  0xb4   : > { %v566_v18 = vrot.slane %v565_v17, 4 }
  0xb6   : > { %v567_v19 = vadd.f32 %v566_v18, %v565_v17 }
  0xb8   : > { %v568_v20 = vrot.slane %v567_v19, 2 }
  0xba   : > { %v569_v21 = vadd.f32 %v568_v20, %v567_v19 }
  0xbc   : > { %v570_v22 = vrot.slane %v569_v21, 1 }
  0xbe   : > { %v571_v24 = vadd.f32 %v570_v22, %v569_v21 }
  0xc0   : > { %v574_v25 = vadd.f32 %v573_v23, %v571_v24 }
  0xc2   : > { %577 = vadd.xlane.f32.xlu0 %v574_v25  ;;  %575 = vst [vmem:[%s510_s15] sm:$0x1] %v574_v25  ;;  %v583_v26 = vmul.f32 %v574_v25, %v574_v25 }
  0xc4   : > { %584 = vadd.xlane.f32.xlu1 %v583_v26 }
 0x14f   : > { %v578_v28 = vpop.xlane.xlu0 %577 }
 0x150   : > { %v579_v30 = vadd.f32 %v578_v28, %v576_v27 }
 0x151   : > { %v585_v31 = vpop.xlane.xlu1 %584 }
 0x152   : > { %581 = vst.msk [vmem:[%s1095_s23] sm:$0x1] %vm580_vm1, %v579_v30  ;;  %v586_v32 = vadd.f32 %v585_v31, %v582_v29 }
 0x154   : > { %587 = vst.msk [vmem:[%s1100_s16] sm:$0x1] %vm580_vm1, %v586_v32 }
 0x155 PF: > { %s21_s17 = sadd.s32 1, %s958_s17   ;;  %s1163_s11 = sld [smem:[#allocation3_spill]] }
 0x156   : > { %p18_p10 = scmp.ge.s32.totalorder %s21_s17, 10   ;;  %s1164_s12 = sld [smem:[#allocation4_spill]] }
 0x157   : > { %s1165_s13 = sld [smem:[#allocation5_spill]]  ;;  %s1166_s14 = sld [smem:[#allocation6_spill]] }
 0x158   : > { %s1167_s15 = sld [smem:[#allocation7_spill]]  ;;  %s1168_s16 = sld [smem:[#allocation8_spill]] }
 0x159   :  { %20 = sbr.rel (!%p18_p10) target bundleno = 6 (0x6), region = 118 }

// kernel: attention_block.5
= control target key start
LH: loop header
LB: loop body
LE: loop exit
PB: predicated region body
PF: predicated region fallthrough
CT: control target
= control target key end

     0   :  { %9 = vsyncpa [#allocation4], 0  ;;  %s860_s0 = inlined_call_operand.vmem [shape: f32[2,16,512], index: 0, kind: input, shape index: {}]   ;;  %s861_s1 = inlined_call_operand.vmem [shape: f32[2,1,512], index: 1, kind: input, shape index: {}]   ;;  %s862_s2 = inlined_call_operand.vmem [shape: f32[2], index: 2, kind: input, shape index: {}]   ;;  %s863_s3 = inlined_call_operand.vmem [shape: f32[2], index: 3, kind: input, shape index: {}]   ;;  %s864_s4 = inlined_call_operand.vmem [shape: f32[2,16,512], index: 4, kind: output, shape index: {}]  }
   0x1   :  { %10 = vsyncpa [#allocation6], 0  ;;  %s707_s15 = smov 0   ;;  %s709_s16 = smov 0  }
   0x2   :  { %s711_s17 = smov 0   ;;  %s713_s18 = smov 0  }
   0x3   :  { %s715_s19 = smov 0   ;;  %s717_s20 = smov 0  }
   0x4   :  { %s719_s21 = smov 0  }
   0x5 LB: > { %s484_s22 = sadd.s32 4294967295, %s678_s21   ;;  %s25_s23 = sadd.s32 1, %s670_s19  ;;  %s678_s21 = sphi %s719_s21, %s16_s21   ;;  %s674_s20 = sphi %s717_s20, %s882_s20   ;;  %s670_s19 = sphi %s715_s19, %s881_s19   ;;  %s666_s18 = sphi %s713_s18, %s880_s18   ;;  %s662_s17 = sphi %s711_s17, %s879_s17   ;;  %s658_s16 = sphi %s709_s16, %s878_s16   ;;  %s654_s15 = sphi %s707_s15, %s877_s15  }
   0x6   : > { %p26_p0 = scmp.ge.s32.totalorder %s25_s23, 4  ;;  %s28_s24 = sadd.s32 1, %s674_s20 }
   0x7   : > { %s37_s25 = sadd.s32 1, %s658_s16  ;;  %p44_p1 = scmp.ne.s32.totalorder %s658_s16, %s654_s15 }
   0x8   : > { %s884_s23 = smov (%p26_p0, %s25_s23), 0  ;;  %s886_s24 = smov (!%p26_p0, %s28_s24), %s674_s20 }
   0x9   : > { %s33_s26 = ssub.s32 %s670_s19, %s884_s23  ;;  %p45_p2 = scmp.eq.s32.totalorder %s678_s21, 0 }
   0xa   : > { %p30_p3 = scmp.ge.s32.totalorder %s886_s24, 2  ;;  %p146_p4 = scmp.eq.s32.totalorder %s484_s22, 7 }
   0xb   : > { %p754_p5 = por %p45_p2, %p44_p1  ;;  %p486_p6 = scmp.ge.s32.totalorder %s678_s21, 1 }
   0xc   : > { %s888_s24 = smov (%p30_p3, %s886_s24), 0  ;;  %p761_p7 = por %p146_p4, %p44_p1 }
   0xd   : > { %s868_s27 = scalar_select %p754_p5, 1, 0 }
   0xe   : > { %s869_s28 = scalar_select %p761_p7, 1, 0 }
   0xf   : > { %p159_p8 = scmp.lt.s32.totalorder %s678_s21, 9  ;;  %s32_s29 = ssub.s32 %s674_s20, %s888_s24 }
  0x10   : > { %s34_s30 = sor.u32 %s33_s26, %s32_s29  ;;  %p772_p11 = scmp.eq.s32.totalorder %s484_s22, 0 }
  0x11   : > { %p768_p9 = pnand %p486_p6, %p159_p8  ;;  %p35_p10 = scmp.eq.s32.totalorder %s34_s30, 0 }
  0x12   : > { %s871_s6 = scalar_select %p772_p11, 1, 0 }
  0x13   : > { %s870_s5 = scalar_select %p768_p9, 1, 0 }
  0x14   : > { %p513_p12 = pneg %p768_p9  ;;  %s172_s9 = sshll.u32 %s862_s2, 4  ;;  %s173_s9 = int_to_ptr.vmem [resolvable:$true] %s172_s9 }
  0x15   : > { %s782_s10 = scalar_select %p35_p10, %s658_s16, %s37_s25  }
  0x16   : > { %p786_p13 = pnand %p772_p11, %p513_p12  ;;  %s183_s14 = sshll.u32 %s863_s3, 4  ;;  %s184_s14 = int_to_ptr.vmem [resolvable:$true] %s183_s14 }
  0x17   : > { %s586_s22 = scalar_lea.vmem %s173_s9, 16  ;;  %p594_p4 = scmp.lt.s32.totalorder %s173_s9, %s173_s9 }
  0x18   : > { %p587_p0 = scmp.ne.s32.totalorder %s173_s9, %s586_s22  ;;  %p588_p1 = pneg %p786_p13 }
  0x19   : > { %p595_p6 = scmp.lt.s32.totalorder %s586_s22, %s586_s22 }
  0x1a   : > { %p589_p2 = pnand %p588_p1, %p587_p0 }
  0x1b   : > { %p596_p8 = por %p595_p6, %p594_p4 }
  0x1c   : > { %p590_p3 = pneg %p589_p2 }
  0x1e   : > { %p597_p10 = pnand %p596_p8, %p590_p3 }
  0x20   : > { %600 = shalt.err (!%p597_p10)
}
  0x21   : > { %s680_s25 = smov [#allocation3]   ;;  %s601_s26 = scalar_lea.vmem %s184_s14, 16 }
  0x22   : > { %516 = dma.vmem_to_smem (!%p786_p13), %s173_s9, 16, %s680_s25, [#allocation4]  }
  0x23   : > { %p602_p12 = scmp.ne.s32.totalorder %s184_s14, %s601_s26  ;;  %p609_p9 = scmp.lt.s32.totalorder %s184_s14, %s184_s14 }
  0x24   : > { %p610_p5 = scmp.lt.s32.totalorder %s601_s26, %s601_s26 }
  0x25   : > { %p604_p7 = pnand %p602_p12, %p588_p1 }
  0x26   : > { %p611_p0 = por %p610_p5, %p609_p9 }
  0x27   : > { %p605_p11 = pneg %p604_p7 }
  0x29   : > { %p612_p2 = pnand %p611_p0, %p605_p11 }
  0x2b   : > { %615 = shalt.err (!%p612_p2)
}
  0x2c   : > { %s681_s29 = smov [#allocation5]   ;;  %p489_p3 = scmp.ge.s32.totalorder %s678_s21, 8 }
  0x2d   : > { %519 = dma.vmem_to_smem (!%p786_p13), %s184_s14, 16, %s681_s29, [#allocation6]  }
  0x2e   : > { %190 = sbr.rel (%p489_p3) target bundleno = 61 (0x3d), region = 24  ;;  %p873_p4 = scmp.ne.s32.totalorder (!%p489_p3), %s868_s27, 0 }
  0x35   : > { %193 = sbr.rel (!%p873_p4) target bundleno = 61 (0x3d), region = 28  ;;  %s195_s30 = sand.u32 (%p873_p4), 1, %s658_s16  }
  0x36   : > { %s491_s7 = sshll.u32 (%p873_p4), %s674_s20, 3  ;;  %s490_s8 = sshll.u32 (%p873_p4), %s195_s30, 4 }
  0x37   : > { %s199_s9 = sadd.s32 (%p873_p4), %s670_s19, %s491_s7  ;;  %s197_s11 = scalar_lea.vmem (%p873_p4), [#allocation2], %s490_s8 }
  0x38   : > { %s492_s12 = sshll.u32 (%p873_p4), %s199_s9, 3 }
  0x39   : > { %s201_s25 = scalar_lea.vmem (%p873_p4), %s860_s0, %s492_s12 }
  0x3a   : > { %v231_v0 = vld [vmem:[%s201_s25] sm:$0xff] (%p873_p4) }
  0x3b   : > { %v233_v1 = vld [vmem:[%s201_s25 + $0x20] sm:$0xff] (%p873_p4)  ;;  %232 = vst [vmem:[%s197_s11] sm:$0xff] (%p873_p4), %v231_v0 }
  0x3c   : > { %234 = vst [vmem:[%s197_s11 + $0x8] sm:$0xff] %v233_v1 }
  0x3d PF: > { %p874_p5 = scmp.ne.s32.totalorder %s870_s5, 0 }
  0x3e   : > { %s256_s27 = sand.u32 (!%p874_p5), 1, %s654_s15   ;;  %p875_p7 = scmp.ne.s32.totalorder (!%p874_p5), %s871_s6, 0 }
  0x3f   : > { %253 = sbr.rel (%p874_p5) target bundleno = 127 (0x7f), region = 70  ;;  %s811_s14 = sshll.u32 (!%p874_p5), %s256_s27, 4 }
  0x40   : > { %s258_s26 = scalar_lea.vmem (!%p874_p5), [#allocation2], %s811_s14 }
  0x46   : > { %645 = dma.done.wait (%p875_p7), [#allocation4], 16  }
  0x47   : > { %647 = vsyncadd (%p875_p7), [#allocation4], 4294967280 }
  0x48   : > { %649 = dma.done.wait (%p875_p7), [#allocation6], 16  }
  0x49   : > { %651 = vsyncadd (%p875_p7), [#allocation6], 4294967280 }
  0x4a   : > { %270 = sfence }
  0x4b   : > { %p296_p9 = scmp.lt.s32.totalorder %s666_s18, 1  ;;  %p298_p11 = scmp.lt.s32.totalorder %s662_s17, 3  ;;  %v319_v10 = vlaneseq  ;;  %v316_v14 = vld [vmem:[%s258_s26] sm:$0xff]  ;;  %v317_v15 = vld [vmem:[%s258_s26 + $0x8] sm:$0xff] }
  0x4c   : > { %s304_s15 = sld [smem:[#allocation3 + %s666_s18]]  ;;  %s295_s13 = scalar_lea.vmem [#allocation7], %s811_s14 }
  0x4d   : > { %s297_s5 = scalar_select %p296_p9, %s666_s18, 1  ;;  %v320_v11 = vshrl.u32 %v319_v10, 7 }
  0x4e   : > { %s299_s29 = scalar_select %p298_p11, %s662_s17, 3 }
  0x4f   : > { %s498_s30 = sshll.u32 %s297_s5, 2  ;;  %s307_s7 = sld [smem:[#allocation5 + %s666_s18]]  ;;  %v321_v12 = vsub.s32 0, %v320_v11 }
  0x50   : > { %s301_s8 = sadd.s32 %s498_s30, %s299_s29  ;;  %p876_p13 = scmp.ne.s32.totalorder %s869_s28, 0 }
  0x51   : > { %s302_s6 = scalar_lea.vmem %s861_s1, %s301_s8  ;;  %s501_s22 = sshll.u32 (%p876_p13), %s666_s18, 3 }
  0x52   : > { %v303_v2 = vld [vmem:[%s302_s6] sm:$0x1]  ;;  %v305_v3 = vstv %s304_s15  ;;  %s336_s25 = sadd.s32 (%p876_p13), %s662_s17, %s501_s22 }
  0x53   : > { %v306_v4 = vmul.f32 %v305_v3, %v303_v2  ;;  %s502_s11 = sshll.u32 (%p876_p13), %s336_s25, 3 }
  0x54   : > { %s338_s26 = scalar_lea.vmem (%p876_p13), %s864_s4, %s502_s11 }
  0x55   : > { %v308_v5 = vstv %s307_s7 }
  0x56   : > { %v309_v6 = vadd.f32 %v308_v5, %v306_v4 }
  0x58   : > { %v499_v7 = vmul.f32 -1.442695, %v309_v6 }
  0x5a   : > { %582 = vpow2.f32 %v499_v7 }
  0x64   : > { %v583_v8 = vpop.eup %582 }
  0x65   : > { %v313_v9 = vadd.f32 1.0, %v583_v8 }
  0x67   : > { %584 = vrcp.f32 %v313_v9 }
  0x70   : > { %334 = sbr.rel (!%p876_p13) target bundleno = 127 (0x7f), region = 86 }
  0x71   : > { %v585_v13 = vpop.eup %584 }
  0x72   : > { %v322_v16 = vrot.slane %v585_v13, %v321_v12 }
  0x74   : > { %v324_v17 = vmul.f32 %v322_v16, %v316_v14  ;;  %v325_v18 = vmul.f32 %v322_v16, %v317_v15 }
  0x76   : > { %326 = vst [vmem:[%s295_s13] sm:$0xff] %v324_v17  ;;  %327 = vst [vmem:[%s295_s13 + $0x8] sm:$0xff] %v325_v18 }
  0x7d   : > { %v368_v19 = vld [vmem:[%s295_s13] sm:$0xff]  ;;  %v370_v20 = vld [vmem:[%s295_s13 + $0x8] sm:$0xff] }
  0x7e   : > { %369 = vst [vmem:[%s338_s26] sm:$0xff] %v368_v19  ;;  %371 = vst [vmem:[%s338_s26 + $0x20] sm:$0xff] %v370_v20 }
  0x7f PF: > { %s16_s21 = sadd.s32 1, %s678_s21   ;;  %s877_s15 = smov %s658_s16 }
  0x80   : > { %p13_p1 = scmp.ge.s32.totalorder %s16_s21, 10   ;;  %s878_s16 = smov %s782_s10 }
  0x81   : > { %s879_s17 = smov %s670_s19  ;;  %s880_s18 = smov %s674_s20 }
  0x82   : > { %s881_s19 = smov %s884_s23  ;;  %s882_s20 = smov %s888_s24 }
  0x83   :  { %15 = sbr.rel (!%p13_p1) target bundleno = 5 (0x5), region = 159 }
  0x8a   :  { %387 = vsyncpa [#allocation4], 1 }
  0x8b   :  { %389 = vsyncpa [#allocation4 + $0x1], 1 }
  0x8c   :  { %390 = vsyncpa [#allocation6], 1 }

// kernel: attention_block.3
= control target key start
LH: loop header
LB: loop body
LE: loop exit
PB: predicated region body
PF: predicated region fallthrough
CT: control target
= control target key end

     0   :  { %s1693_s0 = inlined_call_operand.vmem [shape: f32[2,16,512], index: 0, kind: input, shape index: {}]   ;;  %s1694_s1 = inlined_call_operand.vmem [shape: f32[2,16,512], index: 1, kind: input, shape index: {}]   ;;  %s1695_s2 = inlined_call_operand.vmem [shape: f32[8,16], index: 2, kind: input, shape index: {}]   ;;  %s1696_s3 = inlined_call_operand.vmem [shape: f32[8,1], index: 3, kind: input, shape index: {}]   ;;  %s1697_s4 = inlined_call_operand.vmem [shape: f32[8,16], index: 4, kind: input, shape index: {}]   ;;  %s1698_s5 = inlined_call_operand.vmem [shape: f32[8,1], index: 5, kind: input, shape index: {}]   ;;  %s1699_s6 = inlined_call_operand.vmem [shape: f32[2,8,512], index: 6, kind: output, shape index: {0}]   ;;  %s1700_s7 = inlined_call_operand.vmem [shape: f32[2,8,512], index: 7, kind: output, shape index: {1}]   ;;  %s1701_s8 = inlined_call_operand.vmem [shape: f32[2,2,8,1], index: 8, kind: output, shape index: {2}]   ;;  %s1702_s9 = inlined_call_operand.vmem [shape: f32[2,2,8,1], index: 9, kind: output, shape index: {3}]   ;;  %s1703_s10 = inlined_call_operand.vmem [shape: f32[2,2,8,1], index: 10, kind: output, shape index: {4}]   ;;  %s1704_s11 = inlined_call_operand.vmem [shape: f32[2,2,8,1], index: 11, kind: output, shape index: {5}]  }
   0x1   :  { %1710 = sst [smem:[#allocation10_spill]] %s1693_s0 }
   0x2   :  { %1711 = sst [smem:[#allocation11_spill]] %s1694_s1 }
   0x3   :  { %1712 = sst [smem:[#allocation12_spill]] %s1697_s4 }
   0x4   :  { %1713 = sst [smem:[#allocation13_spill]] %s1698_s5 }
   0x5   :  { %s1503_s17 = smov 0   ;;  %s1505_s18 = smov 0  }
   0x6   :  { %s1507_s19 = smov 0   ;;  %s1509_s20 = smov 0  }
   0x7   :  { %s1511_s21 = smov 0   ;;  %s1513_s22 = smov 0  }
   0x8   :  { %s1515_s23 = smov 0   ;;  %s1517_s24 = smov 0  }
   0x9   :  { %s1519_s25 = smov 0  }
   0xa LB: > { %1714 = sst [smem:[#allocation4_spill]] %s1424_s22  ;;  %s34_s26 = sadd.s32 1, %s1424_s22  ;;  %s1436_s25 = sphi %s1519_s25, %s22_s25   ;;  %s1432_s24 = sphi %s1517_s24, %s1734_s24   ;;  %s1428_s23 = sphi %s1515_s23, %s1729_s23   ;;  %s1424_s22 = sphi %s1513_s22, %s1728_s22   ;;  %s1420_s21 = sphi %s1511_s21, %s1733_s21   ;;  %s1416_s20 = sphi %s1509_s20, %s1727_s20   ;;  %s1412_s19 = sphi %s1507_s19, %s1726_s19   ;;  %s1408_s18 = sphi %s1505_s18, %s1732_s18   ;;  %s1404_s17 = sphi %s1503_s17, %s1731_s17  }
   0xb   : > { %1715 = sst [smem:[#allocation5_spill]] %s1428_s23  ;;  %p35_p0 = scmp.ge.s32.totalorder %s34_s26, 2 }
   0xc   : > { %s37_s27 = sadd.s32 1, %s1428_s23  ;;  %s1222_s28 = sshll.u32 %s1428_s23, 1 }
   0xd   : > { %s1736_s26 = smov (%p35_p0, %s34_s26), 0  ;;  %s1738_s27 = smov (!%p35_p0, %s37_s27), %s1428_s23 }
   0xe   : > { %1716 = sst [smem:[#allocation6_spill]] %s1736_s26  ;;  %s41_s29 = sadd.s32 1, %s1432_s24 }
   0xf   : > { %p61_p1 = scmp.ne.s32.totalorder %s1408_s18, %s1404_s17  ;;  %p39_p2 = scmp.ge.s32.totalorder %s1738_s27, 2 }
  0x10   : > { %p62_p3 = scmp.eq.s32.totalorder %s1436_s25, 0  ;;  %s1559_s30 = sadd.s32 %s1424_s22, %s1222_s28 }
  0x11   : > { %s1740_s27 = smov (%p39_p2, %s1738_s27), 0  ;;  %s1742_s29 = smov (!%p39_p2, %s41_s29), %s1432_s24 }
  0x12   : > { %1717 = sst [smem:[#allocation7_spill]] %s1740_s27  ;;  %s1223_s12 = sshll.u32 %s1740_s27, 1 }
  0x13   : > { %p1565_p4 = por %p62_p3, %p61_p1  ;;  %p43_p5 = scmp.ge.s32.totalorder %s1742_s29, 2 }
  0x14   : > { %s48_s14 = sadd.s32 %s1223_s12, %s1736_s26  ;;  %s54_s28 = sadd.s32 1, %s1408_s18 }
  0x15   : > { %s50_s15 = ssub.s32 %s1559_s30, %s48_s14  ;;  %s1744_s29 = smov (%p43_p5, %s1742_s29), 0 }
  0x16   : > { %1719 = sst [smem:[#allocation8_spill]] %s1744_s29  ;;  %s49_s16 = ssub.s32 %s1432_s24, %s1744_s29 }
  0x17   : > { %s51_s23 = sor.u32 %s50_s15, %s49_s16  ;;  %p1231_p7 = scmp.ge.s32.totalorder %s1436_s25, 8 }
  0x18   : > { %p52_p6 = scmp.eq.s32.totalorder %s51_s23, 0 }
  0x19   : > { %391 = sbr.rel (%p1231_p7) target bundleno = 56 (0x38), region = 32 }
  0x1a   : > { %s1577_s22 = scalar_select %p52_p6, %s1408_s18, %s54_s28  }
  0x1c   : > { %1720 = sst [smem:[#allocation9_spill]] %s1577_s22 }
  0x20   : > { %394 = sbr.rel (!%p1565_p4) target bundleno = 44 (0x2c), region = 36  ;;  %s396_s12 = sand.u32 (%p1565_p4), 1, %s1408_s18  }
  0x21   : > { %s1234_s14 = sshll.u32 (%p1565_p4), %s1432_s24, 3  ;;  %s1232_s27 = sshll.u32 (%p1565_p4), %s396_s12, 4 }
  0x22   : > { %s402_s26 = sadd.s32 (%p1565_p4), %s1234_s14, %s1559_s30  ;;  %s1721_s0 = sld [smem:[#allocation10_spill]] (%p1565_p4) }
  0x23   : > { %s1235_s5 = sshll.u32 (%p1565_p4), %s402_s26, 3  ;;  %s398_s16 = scalar_lea.vmem (%p1565_p4), [#allocation2], %s1232_s27 }
  0x28   : > { %s404_s23 = scalar_lea.vmem %s1721_s0, %s1235_s5 }
  0x29   : > { %v434_v0 = vld [vmem:[%s404_s23] sm:$0xff] }
  0x2a   : > { %v436_v1 = vld [vmem:[%s404_s23 + $0x20] sm:$0xff]  ;;  %435 = vst [vmem:[%s398_s16] sm:$0xff] %v434_v0 }
  0x2b   : > { %437 = vst [vmem:[%s398_s16 + $0x8] sm:$0xff] %v436_v1 }
  0x2c PF: > { %443 = sbr.rel (!%p1565_p4) target bundleno = 56 (0x38), region = 74  ;;  %s445_s28 = sand.u32 (%p1565_p4), 1, %s1408_s18  }
  0x2d   : > { %s1238_s12 = sshll.u32 (%p1565_p4), %s1432_s24, 3  ;;  %s1236_s14 = sshll.u32 (%p1565_p4), %s445_s28, 4 }
  0x2e   : > { %s451_s26 = sadd.s32 (%p1565_p4), %s1238_s12, %s1559_s30  ;;  %s1722_s1 = sld [smem:[#allocation11_spill]] (%p1565_p4) }
  0x2f   : > { %s1239_s22 = sshll.u32 (%p1565_p4), %s451_s26, 3  ;;  %s447_s27 = scalar_lea.vmem (%p1565_p4), [#allocation3], %s1236_s14 }
  0x34   : > { %s453_s5 = scalar_lea.vmem %s1722_s1, %s1239_s22 }
  0x35   : > { %v483_v2 = vld [vmem:[%s453_s5] sm:$0xff] }
  0x36   : > { %v485_v3 = vld [vmem:[%s453_s5 + $0x20] sm:$0xff]  ;;  %484 = vst [vmem:[%s447_s27] sm:$0xff] %v483_v2 }
  0x37   : > { %486 = vst [vmem:[%s447_s27 + $0x8] sm:$0xff] %v485_v3 }
  0x38 PF: > { %p1240_p8 = scmp.ge.s32.totalorder %s1436_s25, 1  ;;  %p491_p9 = scmp.lt.s32.totalorder %s1436_s25, 9 }
  0x3a   : > { %p492_p10 = pnand %p1240_p8, %p491_p9 }
  0x3b   : > { %s498_s4 = sand.u32 (!%p492_p10), 1, %s1404_s17   ;;  %s1243_s22 = sshll.u32 (!%p492_p10), %s1416_s20, 1 }
  0x3c   : > { %495 = sbr.rel (%p492_p10) target bundleno = 455 (0x1c7), region = 112  ;;  %s1600_s30 = sshll.u32 (!%p492_p10), %s498_s4, 4 }
  0x3d   : > { %s600_s13 = sadd.s32 (!%p492_p10), %s1412_s19, %s1243_s22  ;;  %p601_p11 = scmp.lt.s32.totalorder (!%p492_p10), %s1420_s21, 1 }
  0x3e   : > { %p603_p12 = scmp.lt.s32.totalorder (!%p492_p10), %s600_s13, 3  ;;  %p625_p13 = scmp.lt.s32.totalorder (!%p492_p10), %s1416_s20, 1 }
  0x3f   : > { %s507_s29 = scalar_lea.vmem (!%p492_p10), [#allocation3], %s1600_s30  ;;  %p1257_p0 = scmp.ne.s32.totalorder (!%p492_p10), %s1412_s19, 0 }
  0x43   : > { %s1746_s21 = smov (!%p601_p11, %s1420_s21), 1  ;;  %s1748_s13 = smov (!%p603_p12, %s600_s13), 3 }
  0x44   : > { %s1244_s15 = sshll.u32 %s1746_s21, 2  ;;  %s1249_s28 = sshll.u32 %s1746_s21, 1  ;;  %vm659_vm0 = vcmask (!%p1257_p0), 7168   ;;  %v1438_v4 = vmov (!%p1257_p0), 0.0  }
  0x45   : > { %s606_s23 = sadd.s32 %s1244_s15, %s1748_s13  ;;  %s1750_s20 = smov (!%p625_p13, %s1416_s20), 1 }
  0x46   : > { %s1245_s16 = sshll.u32 %s606_s23, 3  ;;  %s628_s27 = sadd.s32 %s1249_s28, %s1750_s20 }
  0x47   : > { %s1609_s26 = scalar_lea.vmem %s1699_s6, %s1245_s16  ;;  %s1614_s5 = scalar_lea.vmem %s1700_s7, %s1245_s16 }
  0x48   : > { %s1250_s4 = sshll.u32 %s628_s27, 3  ;;  %s500_s28 = scalar_lea.vmem [#allocation2], %s1600_s30 }
  0x49   : > { %s1620_s1 = scalar_lea.vmem %s1701_s8, %s1250_s4  ;;  %s1625_s15 = scalar_lea.vmem %s1702_s9, %s1250_s4 }
  0x4a   : > { %s1630_s14 = scalar_lea.vmem %s1703_s10, %s1250_s4  ;;  %s1635_s20 = scalar_lea.vmem %s1704_s11, %s1250_s4  ;;  %660 = vst.msk [vmem:[%s1620_s1] sm:$0xff] (!%p1257_p0), %vm659_vm0, %v1438_v4  ;;  %661 = vst.msk [vmem:[%s1625_s15] sm:$0xff] (!%p1257_p0), %vm659_vm0, %v1438_v4 }
  0x4b   : > { %658 = sbr.rel (%p1257_p0) target bundleno = 82 (0x52), region = 124  ;;  %662 = vst.msk [vmem:[%s1630_s14] sm:$0xff] (!%p1257_p0), %vm659_vm0, %v1438_v4  ;;  %663 = vst.msk [vmem:[%s1635_s20] sm:$0xff] (!%p1257_p0), %vm659_vm0, %v1438_v4 }
  0x52 PF: > { %v665_v5 = vld [vmem:[%s500_s28] sm:$0xff]  ;;  %v666_v6 = vld [vmem:[%s500_s28 + $0x8] sm:$0xff]  ;;  %v1439_v8 = vmov 0.0|0.0   ;;  %vm1440_vm1 = vmmov 0   ;;  %v1441_v12 = vmov 0.0   ;;  %vm673_vm2 = vcmask 130048  }
  0x53   : > { %v748_v7 = vld [vmem:[%s507_s29] sm:$0xff]  ;;  %1282 = vmatprep.subr.bf16.mxu0 %v1439_v8  ;;  %1285 = vmatprep.subr.bf16.mxu1 %v1439_v8  ;;  %v1283_v9 = vpack.c.bf16 %v666_v6, %v665_v5  ;;  %v749_v10 = vld [vmem:[%s507_s29 + $0x8] sm:$0xff]  ;;  %v1442_v15 = vmov 0   ;;  %s1723_s13 = sld [smem:[#allocation12_spill]]  ;;  %s1724_s12 = sld [smem:[#allocation13_spill]]  ;;  %vm835_vm3 = vcmask 7168  }
  0x54   : > { %v1286_v11 = vpack.c.bf16 %v749_v10, %v748_v7  ;;  %1272 = vmatprep.mubr.msk.f32.mxu0 %vm1440_vm1, %v1441_v12  ;;  %1279 = vmatprep.mubr.msk.f32.mxu1 %vm1440_vm1, %v1441_v12  ;;  %v667_v13 = vld [vmem:[%s1696_s3] sm:$0xff] }
  0x55   : > { %1284 = vmatpush3.bf16.msra.mxu0 %v1283_v9  ;;  %v664_v14 = vld [vmem:[%s1695_s2] sm:$0xff]  ;;  %1365 = vset.pattern.permute.xlu0 %v1442_v15 }
  0x56   : > { %1287 = vmatpush3.bf16.msra.mxu1 %v1286_v11  ;;  %670 = vperm.xlu0 %1365, %v667_v13   ;;  %v831_v28 = vld [vmem:[%s1620_s1] sm:$0xff] }
  0x57   : > { %v843_v29 = vld [vmem:[%s1630_s14] sm:$0xff] }
  0x58   : > { %1273 = vmatmul.mubr.msk.f32.vlgmr.msra.gmra.mrb[0].mxu0 %vm673_vm2, %v664_v14  ;;  %v837_v34 = vld [vmem:[%s1625_s15] sm:$0xff] }
  0x59   : > { %v747_v16 = vld [vmem:[%s1723_s13] sm:$0xff] }
  0x5a   : > { %v750_v17 = vld [vmem:[%s1724_s12] sm:$0xff]  ;;  %1280 = vmatmul.mubr.msk.f32.vlgmr.msra.gmra.mrb[0].mxu1 %vm673_vm2, %v747_v16 }
  0x5b   : > { %753 = vperm.xlu0 %1365, %v750_v17   ;;  %v848_v37 = vld [vmem:[%s1635_s20] sm:$0xff] }
  0xd5   : > { %v671_v18 = vpop.permute.xlu0 %670 }
  0xda   : > { %v754_v19 = vpop.permute.xlu0 %753 }
 0x12b   : > { %v743_v20 = vpop.f32.mrb[0].mxu0 }
 0x12c   : > { %v744_v22 = vadd.f32 %v743_v20, %v671_v18  ;;  %v1274_v23 = vpop.f32.mrb[1].mxu0 }
 0x12d   : > { %v825_v21 = vpop.f32.mrb[0].mxu1 }
 0x12e   : > { %v826_v24 = vadd.f32 %v825_v21, %v754_v19  ;;  %v1281_v25 = vpop.f32.mrb[1].mxu1  ;;  %829 = vst [vmem:[%s1609_s26] sm:$0xff] %v744_v22  ;;  %832 = vadd.xlane.f32.xlu1 %v744_v22  ;;  %v838_v26 = vmul.f32 %v744_v22, %v744_v22 }
 0x130   : > { %830 = vst [vmem:[%s1614_s5] sm:$0xff] %v826_v24  ;;  %844 = vadd.xlane.f32.xlu0 %v826_v24  ;;  %v849_v27 = vmul.f32 %v826_v24, %v826_v24 }
 0x132   : > { %839 = vadd.xlane.f32.xlu1 %v838_v26 }
 0x136   : > { %850 = vadd.xlane.f32.xlu1 %v849_v27 }
 0x1bb   : > { %v833_v30 = vpop.xlane.xlu1 %832 }
 0x1bc   : > { %v834_v32 = vadd.f32 %v833_v30, %v831_v28 }
 0x1bd   : > { %v845_v31 = vpop.xlane.xlu0 %844 }
 0x1be   : > { %v846_v33 = vadd.f32 %v845_v31, %v843_v29  ;;  %836 = vst.msk [vmem:[%s1620_s1] sm:$0xff] %vm835_vm3, %v834_v32 }
 0x1bf   : > { %v840_v35 = vpop.xlane.xlu1 %839 }
 0x1c0   : > { %847 = vst.msk [vmem:[%s1630_s14] sm:$0xff] %vm835_vm3, %v846_v33  ;;  %v841_v36 = vadd.f32 %v840_v35, %v837_v34 }
 0x1c2   : > { %842 = vst.msk [vmem:[%s1625_s15] sm:$0xff] %vm835_vm3, %v841_v36 }
 0x1c3   : > { %v851_v38 = vpop.xlane.xlu1 %850 }
 0x1c4   : > { %v852_v39 = vadd.f32 %v851_v38, %v848_v37 }
 0x1c6   : > { %853 = vst.msk [vmem:[%s1635_s20] sm:$0xff] %vm835_vm3, %v852_v39 }
 0x1c7 PF: > { %s22_s25 = sadd.s32 1, %s1436_s25   ;;  %s1725_s26 = sld [smem:[#allocation9_spill]] }
 0x1c8   : > { %p19_p1 = scmp.ge.s32.totalorder %s22_s25, 10   ;;  %s1726_s19 = sld [smem:[#allocation4_spill]] }
 0x1c9   : > { %s1727_s20 = sld [smem:[#allocation5_spill]]  ;;  %s1728_s22 = sld [smem:[#allocation6_spill]] }
 0x1ca   : > { %s1729_s23 = sld [smem:[#allocation7_spill]]  ;;  %s1730_s1 = sld [smem:[#allocation8_spill]] }
 0x1cb   : > { %s1731_s17 = smov %s1408_s18  ;;  %s1733_s21 = smov %s1432_s24 }
 0x1cc   :  { %21 = sbr.rel (!%p19_p1) target bundleno = 10 (0xa), region = 227 }
 0x1cd   : > { %s1732_s18 = smov %s1725_s26 }
 0x1d0   : > { %s1734_s24 = smov %s1730_s1 }

</bundles_post_ra>
